<compile_context>
chip_gen: v7x
topology: tpu7x:2x2x1
jax: 0.10.0
libtpu: 0.0.40
codegen_flags: <defaults>
</compile_context>

<pallas_src>
import functools

import jax
import jax.numpy as jnp
from jax.experimental import pallas as pl
from jax.experimental.pallas import tpu as pltpu


def _cdiv(a, b):
    return -(-a // b)


def _round_up(a, b):
    return _cdiv(a, b) * b


def _tpu_vmem_bytes():
    try:
        return int(pltpu.get_tpu_info().vmem_capacity_bytes)
    except Exception:
        return 64 << 20          # conservative fallback (v7x physical VMEM)


def mil_kernel(n_valid_ref,
               feats_ref, w_cat_ref, b_cat_ref, w_a2_ref, b_a2_ref,
               a_ref, m_ref, l_ref, acc_ref, *, e_dim):
    """One N-tile of the MIL head (grid = (core_split, inner_tiles)).

    n_valid_ref : SMEM [1] int32       number of real (unpadded) patches
    feats_ref   : [TILE_N, F]          streamed patch features (compute dtype)
    w_cat_ref   : [F, E+D]             concat(w_emb, w_emb @ w_a1) (compute dtype)
    b_cat_ref   : [1, E+D]  f32        concat(b_emb, b_emb @ w_a1 + b_a1)
    w_a2_ref    : [D, K]    f32        attention Linear 2
    b_a2_ref    : [1, K]    f32
    a_ref       : [K, TILE_N] f32      attention logits (lane-dense), per tile
    m/l/acc_ref : [K,1]/[K,1]/[K,E]    per-core-split online-softmax partials
                  (f32 output blocks, resident across the inner reduction axis)
    """
    s = pl.program_id(0)          # core-split index ("parallel": shards across TCs)
    i = pl.program_id(1)          # N-tile index within this split (reduction)
    inner = pl.num_programs(1)
    tile_n = feats_ref.shape[0]
    n_valid = n_valid_ref[0]

    @pl.when(i == 0)
    def _():
        m_ref[...] = jnp.full_like(m_ref, -jnp.inf)
        l_ref[...] = jnp.zeros_like(l_ref)
        acc_ref[...] = jnp.zeros_like(acc_ref)

    # Fused embedding + attention-hidden projection: one [T,F]@[F,E+D] dot keeps
    # the MXU 256 lanes wide (v6e/v7x) and removes the serial emb -> h
    # dependency.  f32 accumulation; only this dot runs in the compute dtype.
    eh = jnp.dot(feats_ref[...], w_cat_ref[...],
                 preferred_element_type=jnp.float32) + b_cat_ref[...]     # [T, E+D]
    emb = eh[:, :e_dim]                      # [T, E]  == embedding(conv_layers_out)
    h = jnp.tanh(eh[:, e_dim:])              # [T, D]  == tanh(Linear1(emb))

    # Attention logits (tiny K-wide dot, kept fully f32).
    logits = jnp.dot(h, w_a2_ref[...],
                     preferred_element_type=jnp.float32) + b_a2_ref[...]  # [T, K]

    # Mask padded rows out of the softmax stats.  f32 + finite (-1e30) constant:
    # a fully padded tile yields exp(-1e30 - m) == 0 (no NaN), and a fully
    # padded core-split is zeroed exactly in the wrapper combine.  This costs a
    # few VPU ops on a [T, K] tile -- noise next to the F-wide dot above, and
    # keeping it unconditional makes multi-padded-tile bucketing safe.
    row0 = (s * inner + i) * tile_n
    row = row0 + jax.lax.broadcasted_iota(jnp.int32, (tile_n, 1), 0)
    logits = jnp.where(row < n_valid, logits, -1e30)

    # A = transpose(A, 1, 0) -> [K, T]; written lane-dense per tile.
    logits_t = logits.T
    a_ref[...] = logits_t

    # Online softmax over patches + running softmax-weighted pooling (per split).
    tile_max = jnp.max(logits_t, axis=1, keepdims=True)         # [K, 1]
    m_new = jnp.maximum(m_ref[...], tile_max)
    alpha = jnp.exp(m_ref[...] - m_new)                         # [K, 1]
    p_t = jnp.exp(logits_t - m_new)                             # [K, T] f32
    l_ref[...] = alpha * l_ref[...] + jnp.sum(p_t, axis=1, keepdims=True)
    # Pooling dot kept fully f32 (p_t, emb): tiny [K,T]@[T,E]; tightens wsi.
    acc_ref[...] = alpha * acc_ref[...] + jnp.dot(
        p_t, emb, preferred_element_type=jnp.float32)           # [K, E]
    m_ref[...] = m_new


def _pick_tiling(n, f, e, d, k, itemsize, core_split, t_cap=4096):
    """Pick (tile_n, total_tiles): largest tile whose streamed feats + per-tile
    f32 intermediates + resident weights fit this generation's VMEM, then a tile
    count that keeps zero-padding below one tile (no wasted DMA on pad rows)."""
    budget = int(_tpu_vmem_bytes() * 0.55)       # headroom for Mosaic internals
    # Resident operands, counted double-buffered (constant-index BlockSpecs
    # still allocate two buffers).
    # TODO(synk): pipeline_mode=pl.Buffered(1) on the resident weight specs
    # would free one copy of w_cat; left off pending API stability.
    resident = 2 * (f * (e + d) * itemsize + (e + d) * 4 + d * k * 4 + k * 4)
    per_row = (2 * f * itemsize            # feats double buffer
               + 3 * (e + d) * 4           # eh / emb / h / p_t f32 intermediates
               + 2 * k * 4)                # a-logits output block (double-buffered)
    avail = max(budget - resident, per_row * 128)
    t_max = max(128, min(t_cap, (avail // per_row) // 128 * 128))
    n_round = _round_up(max(n, 1), 128)
    total_tiles = _round_up(_cdiv(n_round, t_max), core_split)
    tile_n = _round_up(_cdiv(n_round, total_tiles), 128)
    return tile_n, total_tiles


def mil_forward(feats, params, *, tile_n=None, core_split=1,
                compute_dtype=jnp.bfloat16):
    """feats: [N, F] conv_layers_out.  Returns (Y_prob [K], A [K, N])."""
    n, f = feats.shape
    e = params["w_emb"].shape[1]
    d = params["w_a1"].shape[1]
    k = params["w_a2"].shape[1]
    cdt = jnp.dtype(compute_dtype)
    itemsize = cdt.itemsize

    if tile_n is None:
        tile_n, total_tiles = _pick_tiling(n, f, e, d, k, itemsize, core_split)
    else:
        assert tile_n % 128 == 0, "tile_n must be a multiple of 128 (lane width)"
        total_tiles = _round_up(_cdiv(n, tile_n), core_split)
    inner_tiles = total_tiles // core_split
    n_pad = total_tiles * tile_n

    feats_p = feats if n_pad == n else jnp.pad(feats, ((0, n_pad - n), (0, 0)))
    feats_p = feats_p.astype(cdt)

    # Fused first-layer weights (exact in f32; then cast streamed operand dtype).
    w_cat = jnp.concatenate(
        [params["w_emb"], params["w_emb"] @ params["w_a1"]], axis=1).astype(cdt)
    b_cat = jnp.concatenate(
        [params["b_emb"], params["b_emb"] @ params["w_a1"] + params["b_a1"]],
        axis=1).astype(jnp.float32)

    n_valid = jnp.array([n], jnp.int32)          # scalar-prefetched (no recompile
                                                 # across bags with same tiling)

    grid_spec = pltpu.PrefetchScalarGridSpec(
        num_scalar_prefetch=1,
        grid=(core_split, inner_tiles),
        in_specs=[
            pl.BlockSpec((tile_n, f),
                         lambda s, i, nv: (s * inner_tiles + i, 0)),  # feats (streamed)
            pl.BlockSpec((f, e + d), lambda s, i, nv: (0, 0)),        # w_cat (resident)
            pl.BlockSpec((1, e + d), lambda s, i, nv: (0, 0)),        # b_cat
            pl.BlockSpec((d, k), lambda s, i, nv: (0, 0)),            # w_a2
            pl.BlockSpec((1, k), lambda s, i, nv: (0, 0)),            # b_a2
        ],
        out_specs=(
            pl.BlockSpec((k, tile_n),
                         lambda s, i, nv: (0, s * inner_tiles + i)),  # A logits
            pl.BlockSpec((None, k, 1), lambda s, i, nv: (s, 0, 0)),   # m partial
            pl.BlockSpec((None, k, 1), lambda s, i, nv: (s, 0, 0)),   # l partial
            pl.BlockSpec((None, k, e), lambda s, i, nv: (s, 0, 0)),   # acc partial
        ),
    )

    vmem_cap = _tpu_vmem_bytes()
    a_logits, m_p, l_p, acc_p = pl.pallas_call(
        functools.partial(mil_kernel, e_dim=e),
        out_shape=(jax.ShapeDtypeStruct((k, n_pad), jnp.float32),
                   jax.ShapeDtypeStruct((core_split, k, 1), jnp.float32),
                   jax.ShapeDtypeStruct((core_split, k, 1), jnp.float32),
                   jax.ShapeDtypeStruct((core_split, k, e), jnp.float32)),
        grid_spec=grid_spec,
        compiler_params=pltpu.CompilerParams(
            # leading axis shards across TensorCores (v7x); inner axis is the
            # online-softmax reduction over patch tiles.
            dimension_semantics=("parallel", "arbitrary"),
            vmem_limit_bytes=min(int(vmem_cap * 0.75), 100 * 1024 * 1024),
        ),
    )(n_valid, feats_p, w_cat, b_cat,
      params["w_a2"].astype(jnp.float32), params["b_a2"].astype(jnp.float32))

    # Combine per-core-split partial online-softmax states (exact, tiny).
    m_g = jnp.max(m_p, axis=0)                           # [K, 1]
    w_s = jnp.exp(m_p - m_g)                             # [S, K, 1]
    l_g = jnp.sum(w_s * l_p, axis=0)                     # [K, 1]
    acc_g = jnp.sum(w_s * acc_p, axis=0)                 # [K, E]
    wsi = acc_g / l_g            # exact division (review: no approx reciprocal)

    # 'NoChannel' head: Linear(E*K -> E) -> ReLU -> Linear(E -> K); dropout = id.
    flat = wsi.reshape(1, -1)            # [1, K*E]; matches torch .view row-major
    cls = flat @ params["w_bf_torch"].T + params["b_bf"]
    cls = jnp.maximum(cls, 0.0)
    y = cls @ params["w_fc"] + params["b_fc"]            # [1, K]

    # A = softmax(A, dim=1): O(K*N) follow-up on the attention logits (global
    # max/sum over N is only known after all tiles; the pooled wsi_embedding was
    # already normalized via the online softmax).
    a = jax.nn.softmax(a_logits[:, :n], axis=1)
    return jnp.squeeze(y), a             # Y_prob = torch.squeeze(Y_prob)


def make_params(key, fc_input_features, hidden_space_len, num_classes):
    """Deterministic synthetic parameters matching the module's Linear shapes.
    Weights stored pre-transposed as [in, out]; biases as [1, out]."""
    f, e, k = fc_input_features, hidden_space_len, num_classes
    d = hidden_space_len
    keys = jax.random.split(key, 10)

    def lin_w(kk, n_in, n_out):
        return jax.random.normal(kk, (n_in, n_out), jnp.float32) * (n_in ** -0.5)

    w_emb = lin_w(keys[0], f, e)
    b_emb = jax.random.normal(keys[1], (1, e), jnp.float32) * (f ** -0.5)
    w_a1 = lin_w(keys[2], e, d)
    b_a1 = jax.random.normal(keys[3], (1, d), jnp.float32) * (e ** -0.5)
    w_a2 = lin_w(keys[4], d, k)
    b_a2 = jax.random.normal(keys[5], (1, k), jnp.float32) * (d ** -0.5)
    # embedding_before_fc: torch Linear(E*K, E), weight shape [E, E*K]
    w_bf_torch = jax.random.normal(keys[6], (e, k * e), jnp.float32) * ((k * e) ** -0.5)
    b_bf = jax.random.normal(keys[7], (1, e), jnp.float32) * ((k * e) ** -0.5)
    w_fc = lin_w(keys[8], e, k)
    b_fc = jax.random.normal(keys[9], (1, k), jnp.float32) * (e ** -0.5)

    return dict(w_emb=w_emb, b_emb=b_emb, w_a1=w_a1, b_a1=b_a1,
                w_a2=w_a2, b_a2=b_a2, w_bf_torch=w_bf_torch,
                b_bf=b_bf, w_fc=w_fc, b_fc=b_fc)


def mil_reference(feats, params):
    """Plain-JAX reference mirroring the PyTorch forward (NoChannel, eval)."""
    emb = feats @ params["w_emb"] + params["b_emb"]
    h = jnp.tanh(emb @ params["w_a1"] + params["b_a1"])
    a_logits = h @ params["w_a2"] + params["b_a2"]
    a_sm = jax.nn.softmax(a_logits.T, axis=1)                    # [K, N]
    wsi = a_sm @ emb                                             # [K, E]
    flat = wsi.reshape(1, -1)                                    # [1, K*E]
    cls = flat @ params["w_bf_torch"].T + params["b_bf"]
    cls = jnp.maximum(cls, 0.0)
    y = cls @ params["w_fc"] + params["b_fc"]
    return jnp.squeeze(y), a_sm


if __name__ == "__main__":
    # Small shapes consistent with the module's forward:
    #   N patches, fc_input_features F, hidden_space_len E (= D), num_classes K.
    # N=300 with TILE_N=128 exercises the multi-tile grid + padded-row masking.
    N, F, E, K = 300, 256, 128, 4

    key = jax.random.PRNGKey(0)
    k_feat, k_par = jax.random.split(key)
    conv_layers_out = jax.random.normal(k_feat, (N, F), jnp.float32)
    params = make_params(k_par, F, E, K)

    y_ref, a_ref = mil_reference(conv_layers_out, params)

    # Default path: bf16 streamed feats / fused weight, auto tile sizing.
    y_bf, a_bf = mil_forward(conv_layers_out, params)
    jax.block_until_ready((y_bf, a_bf))
    assert y_bf.shape == (K,) and a_bf.shape == (K, N)
    assert jnp.allclose(a_bf.sum(axis=1), 1.0, atol=1e-4)
    assert jnp.allclose(y_bf, y_ref, atol=2e-2, rtol=1e-1)
    assert jnp.allclose(a_bf, a_ref, atol=2e-3)

    # f32 path, explicit small tile -> multi-tile grid + padded-row masking.
    y32, a32 = mil_forward(conv_layers_out, params, tile_n=128,
                           compute_dtype=jnp.float32)
    jax.block_until_ready((y32, a32))
    assert y32.shape == (K,) and a32.shape == (K, N)
    assert jnp.allclose(a32.sum(axis=1), 1.0, atol=1e-5)
    assert jnp.allclose(y32, y_ref, atol=5e-3, rtol=2e-2)
    assert jnp.allclose(a32, a_ref, atol=5e-4)

    # 2-way core split (uses both v7x TensorCores; serializes harmlessly on
    # single-TC chips).  Exercises the partial-state combine and a fully padded
    # trailing tile.
    y2, a2 = mil_forward(conv_layers_out, params, tile_n=128, core_split=2)
    jax.block_until_ready((y2, a2))
    assert y2.shape == (K,) and a2.shape == (K, N)
    assert jnp.allclose(a2.sum(axis=1), 1.0, atol=1e-4)
    assert jnp.allclose(y2, y_ref, atol=2e-2, rtol=1e-1)
    assert jnp.allclose(a2, a_ref, atol=2e-3)

    print("KERNEL_OK")
</pallas_src>

<mosaic_0001>
module attributes {stable_mosaic.version = 11 : i64} {
  func.func @mil_kernel(%arg0: i32, %arg1: i32, %arg2: memref<1xi32, #tpu.memory_space<smem>>, %arg3: memref<384x256xbf16, #tpu.memory_space<vmem>>, %arg4: memref<256x256xbf16, #tpu.memory_space<vmem>>, %arg5: memref<1x256xf32, #tpu.memory_space<vmem>>, %arg6: memref<128x4xf32, #tpu.memory_space<vmem>>, %arg7: memref<1x4xf32, #tpu.memory_space<vmem>>, %arg8: memref<4x384xf32, #tpu.memory_space<vmem>>, %arg9: memref<1x4x1xf32, #tpu.memory_space<vmem>>, %arg10: memref<1x4x1xf32, #tpu.memory_space<vmem>>, %arg11: memref<1x4x128xf32, #tpu.memory_space<vmem>>) attributes {dimension_semantics = [#tpu.dimension_semantics<parallel>, #tpu.dimension_semantics<arbitrary>], iteration_bounds = array<i64: 1, 1>, scalar_prefetch = 1 : i64, scratch_operands = 0 : i64, tpu.core_type = #tpu.core_type<tc>, window_params = [{transform_indices = @transform_0, window_bounds = array<i64: 384, 256>}, {pipeline_mode = #tpu.pipeline_mode<synchronous>, transform_indices = @transform_1, window_bounds = array<i64: 256, 256>}, {pipeline_mode = #tpu.pipeline_mode<synchronous>, transform_indices = @transform_2, window_bounds = array<i64: 1, 256>}, {pipeline_mode = #tpu.pipeline_mode<synchronous>, transform_indices = @transform_3, window_bounds = array<i64: 128, 4>}, {pipeline_mode = #tpu.pipeline_mode<synchronous>, transform_indices = @transform_4, window_bounds = array<i64: 1, 4>}, {transform_indices = @transform_5, window_bounds = array<i64: 4, 384>}, {transform_indices = @transform_6, window_bounds = array<i64: 1, 4, 1>}, {transform_indices = @transform_7, window_bounds = array<i64: 1, 4, 1>}, {transform_indices = @transform_8, window_bounds = array<i64: 1, 4, 128>}]} {
    %c0 = arith.constant 0 : index
    %0 = memref.load %arg2[%c0] : memref<1xi32, #tpu.memory_space<smem>>
    %c0_i32 = arith.constant 0 : i32
    %1 = arith.cmpi eq, %arg1, %c0_i32 : i32
    %2 = arith.extui %1 : i1 to i32
    %c0_i32_0 = arith.constant 0 : i32
    %3 = arith.cmpi ne, %2, %c0_i32_0 : i32
    scf.if %3 {
      %cst_39 = arith.constant 0xFF800000 : f32
      %65 = vector.broadcast %cst_39 : f32 to vector<4x1xf32>
      %c0_40 = arith.constant 0 : index
      %c0_41 = arith.constant 0 : index
      %c0_42 = arith.constant 0 : index
      %66 = vector.load %arg9[%c0_40, %c0_41, %c0_42] : memref<1x4x1xf32, #tpu.memory_space<vmem>>, vector<1x4x1xf32>
      %67 = vector.shape_cast %66 : vector<1x4x1xf32> to vector<4x1xf32>
      %68 = vector.shape_cast %65 : vector<4x1xf32> to vector<1x4x1xf32>
      tpu.vector_store %arg9[%c0_40, %c0_41, %c0_42], %68 {strides = array<i32>} : memref<1x4x1xf32, #tpu.memory_space<vmem>>, vector<1x4x1xf32>,
      %cst_43 = arith.constant 0.000000e+00 : f32
      %69 = vector.broadcast %cst_43 : f32 to vector<4x1xf32>
      %c0_44 = arith.constant 0 : index
      %c0_45 = arith.constant 0 : index
      %c0_46 = arith.constant 0 : index
      %70 = vector.load %arg10[%c0_44, %c0_45, %c0_46] : memref<1x4x1xf32, #tpu.memory_space<vmem>>, vector<1x4x1xf32>
      %71 = vector.shape_cast %70 : vector<1x4x1xf32> to vector<4x1xf32>
      %72 = vector.shape_cast %69 : vector<4x1xf32> to vector<1x4x1xf32>
      tpu.vector_store %arg10[%c0_44, %c0_45, %c0_46], %72 {strides = array<i32>} : memref<1x4x1xf32, #tpu.memory_space<vmem>>, vector<1x4x1xf32>,
      %cst_47 = arith.constant 0.000000e+00 : f32
      %73 = vector.broadcast %cst_47 : f32 to vector<4x128xf32>
      %c0_48 = arith.constant 0 : index
      %c0_49 = arith.constant 0 : index
      %c0_50 = arith.constant 0 : index
      %74 = vector.load %arg11[%c0_48, %c0_49, %c0_50] : memref<1x4x128xf32, #tpu.memory_space<vmem>>, vector<1x4x128xf32>
      %75 = vector.shape_cast %74 : vector<1x4x128xf32> to vector<4x128xf32>
      %76 = vector.shape_cast %73 : vector<4x128xf32> to vector<1x4x128xf32>
      tpu.vector_store %arg11[%c0_48, %c0_49, %c0_50], %76 {strides = array<i32>} : memref<1x4x128xf32, #tpu.memory_space<vmem>>, vector<1x4x128xf32>,
    } else {
    }
    %c0_1 = arith.constant 0 : index
    %c0_2 = arith.constant 0 : index
    %4 = vector.load %arg3[%c0_1, %c0_2] : memref<384x256xbf16, #tpu.memory_space<vmem>>, vector<384x256xbf16>
    %c0_3 = arith.constant 0 : index
    %c0_4 = arith.constant 0 : index
    %5 = vector.load %arg4[%c0_3, %c0_4] : memref<256x256xbf16, #tpu.memory_space<vmem>>, vector<256x256xbf16>
    %cst = arith.constant dense<0.000000e+00> : vector<384x256xf32>
    %6 = tpu.matmul %4, %5, %cst {dimension_numbers = #tpu.dot_dimension_numbers<[1], [0], [0], [1], [0, 0, 1, 1], [], []>} : vector<384x256xbf16>, vector<256x256xbf16>, vector<384x256xf32> -> vector<384x256xf32>
    %c0_5 = arith.constant 0 : index
    %c0_6 = arith.constant 0 : index
    %7 = vector.load %arg5[%c0_5, %c0_6] : memref<1x256xf32, #tpu.memory_space<vmem>>, vector<1x256xf32>
    %8 = vector.broadcast %7 : vector<1x256xf32> to vector<384x256xf32>
    %9 = arith.addf %6, %8 : vector<384x256xf32>
    %10 = vector.extract_strided_slice %9 {offsets = [0, 0], sizes = [384, 128], strides = [1, 1]} : vector<384x256xf32> to vector<384x128xf32>
    %11 = vector.extract_strided_slice %9 {offsets = [0, 128], sizes = [384, 128], strides = [1, 1]} : vector<384x256xf32> to vector<384x128xf32>
    %12 = math.tanh %11 : vector<384x128xf32>
    %c0_7 = arith.constant 0 : index
    %c0_8 = arith.constant 0 : index
    %13 = vector.load %arg6[%c0_7, %c0_8] : memref<128x4xf32, #tpu.memory_space<vmem>>, vector<128x4xf32>
    %cst_9 = arith.constant dense<0.000000e+00> : vector<384x4xf32>
    %14 = tpu.matmul %12, %13, %cst_9 {dimension_numbers = #tpu.dot_dimension_numbers<[1], [0], [0], [1], [0, 0, 1, 1], [], []>} : vector<384x128xf32>, vector<128x4xf32>, vector<384x4xf32> -> vector<384x4xf32>
    %c0_10 = arith.constant 0 : index
    %c0_11 = arith.constant 0 : index
    %15 = vector.load %arg7[%c0_10, %c0_11] : memref<1x4xf32, #tpu.memory_space<vmem>>, vector<1x4xf32>
    %16 = vector.broadcast %15 : vector<1x4xf32> to vector<384x4xf32>
    %17 = arith.addf %14, %16 : vector<384x4xf32>
    %c1_i32 = arith.constant 1 : i32
    %18 = arith.muli %arg0, %c1_i32 : i32
    %19 = arith.addi %18, %arg1 : i32
    %c384_i32 = arith.constant 384 : i32
    %20 = arith.muli %19, %c384_i32 : i32
    %21 = tpu.iota {dimensions = array<i32: 0>} : vector<384x1xi32>
    %22 = vector.broadcast %20 : i32 to vector<384x1xi32>
    %23 = arith.addi %22, %21 : vector<384x1xi32>
    %24 = vector.broadcast %0 : i32 to vector<384x1xi32>
    %25 = arith.cmpi slt, %23, %24 : vector<384x1xi32>
    %cst_12 = arith.constant -1.000000e+30 : f32
    %26 = vector.shape_cast %25 : vector<384x1xi1> to vector<384x1xi1>
    %27 = vector.broadcast %26 : vector<384x1xi1> to vector<384x4xi1>
    %28 = vector.broadcast %cst_12 : f32 to vector<384x4xf32>
    %29 = arith.select %27, %17, %28 : vector<384x4xi1>, vector<384x4xf32>
    %30 = tpu.transpose %29, [1, 0] : vector<384x4xf32> -> vector<4x384xf32>
    %c0_13 = arith.constant 0 : index
    %c0_14 = arith.constant 0 : index
    %31 = vector.load %arg8[%c0_13, %c0_14] : memref<4x384xf32, #tpu.memory_space<vmem>>, vector<4x384xf32>
    tpu.vector_store %arg8[%c0_13, %c0_14], %30 {strides = array<i32>} : memref<4x384xf32, #tpu.memory_space<vmem>>, vector<4x384xf32>,
    %cst_15 = arith.constant dense<0xFF800000> : vector<4xf32>
    %32 = vector.multi_reduction <maximumf>, %30, %cst_15 [1] : vector<4x384xf32> to vector<4xf32>
    %33 = vector.shape_cast %32 : vector<4xf32> to vector<4x1xf32>
    %c0_16 = arith.constant 0 : index
    %c0_17 = arith.constant 0 : index
    %c0_18 = arith.constant 0 : index
    %34 = vector.load %arg9[%c0_16, %c0_17, %c0_18] : memref<1x4x1xf32, #tpu.memory_space<vmem>>, vector<1x4x1xf32>
    %35 = vector.shape_cast %34 : vector<1x4x1xf32> to vector<4x1xf32>
    %36 = arith.maximumf %35, %33 : vector<4x1xf32>
    %c0_19 = arith.constant 0 : index
    %c0_20 = arith.constant 0 : index
    %c0_21 = arith.constant 0 : index
    %37 = vector.load %arg9[%c0_19, %c0_20, %c0_21] : memref<1x4x1xf32, #tpu.memory_space<vmem>>, vector<1x4x1xf32>
    %38 = vector.shape_cast %37 : vector<1x4x1xf32> to vector<4x1xf32>
    %39 = arith.subf %38, %36 : vector<4x1xf32>
    %40 = math.exp %39 : vector<4x1xf32>
    %41 = vector.broadcast %36 : vector<4x1xf32> to vector<4x384xf32>
    %42 = arith.subf %30, %41 : vector<4x384xf32>
    %43 = math.exp %42 : vector<4x384xf32>
    %c0_22 = arith.constant 0 : index
    %c0_23 = arith.constant 0 : index
    %c0_24 = arith.constant 0 : index
    %44 = vector.load %arg10[%c0_22, %c0_23, %c0_24] : memref<1x4x1xf32, #tpu.memory_space<vmem>>, vector<1x4x1xf32>
    %45 = vector.shape_cast %44 : vector<1x4x1xf32> to vector<4x1xf32>
    %46 = arith.mulf %40, %45 : vector<4x1xf32>
    %cst_25 = arith.constant dense<0.000000e+00> : vector<4xf32>
    %47 = vector.multi_reduction <add>, %43, %cst_25 [1] : vector<4x384xf32> to vector<4xf32>
    %48 = vector.shape_cast %47 : vector<4xf32> to vector<4x1xf32>
    %49 = arith.addf %46, %48 : vector<4x1xf32>
    %c0_26 = arith.constant 0 : index
    %c0_27 = arith.constant 0 : index
    %c0_28 = arith.constant 0 : index
    %50 = vector.load %arg10[%c0_26, %c0_27, %c0_28] : memref<1x4x1xf32, #tpu.memory_space<vmem>>, vector<1x4x1xf32>
    %51 = vector.shape_cast %50 : vector<1x4x1xf32> to vector<4x1xf32>
    %52 = vector.shape_cast %49 : vector<4x1xf32> to vector<1x4x1xf32>
    tpu.vector_store %arg10[%c0_26, %c0_27, %c0_28], %52 {strides = array<i32>} : memref<1x4x1xf32, #tpu.memory_space<vmem>>, vector<1x4x1xf32>,
    %c0_29 = arith.constant 0 : index
    %c0_30 = arith.constant 0 : index
    %c0_31 = arith.constant 0 : index
    %53 = vector.load %arg11[%c0_29, %c0_30, %c0_31] : memref<1x4x128xf32, #tpu.memory_space<vmem>>, vector<1x4x128xf32>
    %54 = vector.shape_cast %53 : vector<1x4x128xf32> to vector<4x128xf32>
    %55 = vector.broadcast %40 : vector<4x1xf32> to vector<4x128xf32>
    %56 = arith.mulf %55, %54 : vector<4x128xf32>
    %cst_32 = arith.constant dense<0.000000e+00> : vector<4x128xf32>
    %57 = tpu.matmul %43, %10, %cst_32 {dimension_numbers = #tpu.dot_dimension_numbers<[1], [0], [0], [1], [0, 0, 1, 1], [], []>} : vector<4x384xf32>, vector<384x128xf32>, vector<4x128xf32> -> vector<4x128xf32>
    %58 = arith.addf %56, %57 : vector<4x128xf32>
    %c0_33 = arith.constant 0 : index
    %c0_34 = arith.constant 0 : index
    %c0_35 = arith.constant 0 : index
    %59 = vector.load %arg11[%c0_33, %c0_34, %c0_35] : memref<1x4x128xf32, #tpu.memory_space<vmem>>, vector<1x4x128xf32>
    %60 = vector.shape_cast %59 : vector<1x4x128xf32> to vector<4x128xf32>
    %61 = vector.shape_cast %58 : vector<4x128xf32> to vector<1x4x128xf32>
    tpu.vector_store %arg11[%c0_33, %c0_34, %c0_35], %61 {strides = array<i32>} : memref<1x4x128xf32, #tpu.memory_space<vmem>>, vector<1x4x128xf32>,
    %c0_36 = arith.constant 0 : index
    %c0_37 = arith.constant 0 : index
    %c0_38 = arith.constant 0 : index
    %62 = vector.load %arg9[%c0_36, %c0_37, %c0_38] : memref<1x4x1xf32, #tpu.memory_space<vmem>>, vector<1x4x1xf32>
    %63 = vector.shape_cast %62 : vector<1x4x1xf32> to vector<4x1xf32>
    %64 = vector.shape_cast %36 : vector<4x1xf32> to vector<1x4x1xf32>
    tpu.vector_store %arg9[%c0_36, %c0_37, %c0_38], %64 {strides = array<i32>} : memref<1x4x1xf32, #tpu.memory_space<vmem>>, vector<1x4x1xf32>,
    return
  }
  func.func @transform_0(%arg0: i32, %arg1: i32, %arg2: memref<1xi32, #tpu.memory_space<smem>>) -> (i32, i32) {
    %c1_i32 = arith.constant 1 : i32
    %0 = arith.muli %arg0, %c1_i32 : i32
    %1 = arith.addi %0, %arg1 : i32
    %c0_i32 = arith.constant 0 : i32
    %c0_i32_0 = arith.constant 0 : i32
    return %1, %c0_i32 : i32, i32
  }
  func.func @transform_1(%arg0: i32, %arg1: i32, %arg2: memref<1xi32, #tpu.memory_space<smem>>) -> (i32, i32) {
    %c0_i32 = arith.constant 0 : i32
    %c0_i32_0 = arith.constant 0 : i32
    %c0_i32_1 = arith.constant 0 : i32
    return %c0_i32, %c0_i32_0 : i32, i32
  }
  func.func @transform_2(%arg0: i32, %arg1: i32, %arg2: memref<1xi32, #tpu.memory_space<smem>>) -> (i32, i32) {
    %c0_i32 = arith.constant 0 : i32
    %c0_i32_0 = arith.constant 0 : i32
    %c0_i32_1 = arith.constant 0 : i32
    return %c0_i32, %c0_i32_0 : i32, i32
  }
  func.func @transform_3(%arg0: i32, %arg1: i32, %arg2: memref<1xi32, #tpu.memory_space<smem>>) -> (i32, i32) {
    %c0_i32 = arith.constant 0 : i32
    %c0_i32_0 = arith.constant 0 : i32
    %c0_i32_1 = arith.constant 0 : i32
    return %c0_i32, %c0_i32_0 : i32, i32
  }
  func.func @transform_4(%arg0: i32, %arg1: i32, %arg2: memref<1xi32, #tpu.memory_space<smem>>) -> (i32, i32) {
    %c0_i32 = arith.constant 0 : i32
    %c0_i32_0 = arith.constant 0 : i32
    %c0_i32_1 = arith.constant 0 : i32
    return %c0_i32, %c0_i32_0 : i32, i32
  }
  func.func @transform_5(%arg0: i32, %arg1: i32, %arg2: memref<1xi32, #tpu.memory_space<smem>>) -> (i32, i32) {
    %c1_i32 = arith.constant 1 : i32
    %0 = arith.muli %arg0, %c1_i32 : i32
    %1 = arith.addi %0, %arg1 : i32
    %c0_i32 = arith.constant 0 : i32
    %c0_i32_0 = arith.constant 0 : i32
    return %c0_i32, %1 : i32, i32
  }
  func.func @transform_6(%arg0: i32, %arg1: i32, %arg2: memref<1xi32, #tpu.memory_space<smem>>) -> (i32, i32, i32) {
    %c0_i32 = arith.constant 0 : i32
    %c0_i32_0 = arith.constant 0 : i32
    %c0_i32_1 = arith.constant 0 : i32
    return %arg0, %c0_i32, %c0_i32_0 : i32, i32, i32
  }
  func.func @transform_7(%arg0: i32, %arg1: i32, %arg2: memref<1xi32, #tpu.memory_space<smem>>) -> (i32, i32, i32) {
    %c0_i32 = arith.constant 0 : i32
    %c0_i32_0 = arith.constant 0 : i32
    %c0_i32_1 = arith.constant 0 : i32
    return %arg0, %c0_i32, %c0_i32_0 : i32, i32, i32
  }
  func.func @transform_8(%arg0: i32, %arg1: i32, %arg2: memref<1xi32, #tpu.memory_space<smem>>) -> (i32, i32, i32) {
    %c0_i32 = arith.constant 0 : i32
    %c0_i32_0 = arith.constant 0 : i32
    %c0_i32_1 = arith.constant 0 : i32
    return %arg0, %c0_i32, %c0_i32_0 : i32, i32, i32
  }
}

</mosaic_0001>

<bundles_post_ra>
// kernel: tpu_custom_call.1
= control target key start
LH: loop header
LB: loop body
LE: loop exit
PB: predicated region body
PF: predicated region fallthrough
CT: control target
= control target key end

     0   :  { %16 = vsyncpa [#allocation5], 0  ;;  %s3188_s0 = inlined_call_operand.<no memory space> [shape: s32[1], index: 0, kind: input, shape index: {}]   ;;  %s3189_s1 = inlined_call_operand.hbm [shape: bf16[384,256], index: 1, kind: input, shape index: {}]   ;;  %s3190_s2 = inlined_call_operand.hbm [shape: bf16[256,256], index: 2, kind: input, shape index: {}]   ;;  %s3191_s3 = inlined_call_operand.vmem [shape: f32[1,256], index: 3, kind: input, shape index: {}]   ;;  %s3192_s4 = inlined_call_operand.vmem [shape: f32[128,4], index: 4, kind: input, shape index: {}]   ;;  %s3193_s5 = inlined_call_operand.vmem [shape: f32[1,4], index: 5, kind: input, shape index: {}]   ;;  %s3194_s6 = inlined_call_operand.hbm [shape: f32[4,384], index: 6, kind: output, shape index: {0}]   ;;  %s3195_s7 = inlined_call_operand.vmem [shape: f32[1,4,1], index: 7, kind: output, shape index: {1}]   ;;  %s3196_s8 = inlined_call_operand.vmem [shape: f32[1,4,1], index: 8, kind: output, shape index: {2}]   ;;  %s3197_s9 = inlined_call_operand.hbm [shape: f32[1,4,128], index: 9, kind: output, shape index: {3}]  }
   0x1   :  { %17 = vsyncpa [#allocation8], 0 }
   0x2   :  { %18 = vsyncpa [#allocation6], 0 }
   0x3   :  { %19 = vsyncpa [#allocation11], 0  ;;  %s2598_s30 = smov [#allocation4]   ;;  %s2502_s13 = scalar_lea.hbm %s3189_s1, 6144 }
   0x4   :  { %s30_s10 = sshll.u32 %s2598_s30, 4  ;;  %p2503_p0 = scmp.ne.s32.totalorder %s3189_s1, %s2502_s13  ;;  %s31_s10 = int_to_ptr.vmem [resolvable:$true] %s30_s10 }
   0x5   :  { %p2506_p1 = scmp.lt.u32.totalorder %s2502_s13, %s3189_s1 }
   0x7   :  { %p2508_p2 = pnand %p2506_p1, %p2503_p0 }
   0x9   :  { %2511 = shalt.err (!%p2508_p2)
}
   0xa   :  { %s2512_s18 = scalar_lea.vmem %s31_s10, 6144  ;;  %p2517_p4 = scmp.lt.s32.totalorder %s31_s10, %s31_s10 }
   0xb   :  { %p2513_p3 = scmp.ne.s32.totalorder %s31_s10, %s2512_s18  ;;  %p2518_p5 = scmp.lt.s32.totalorder %s2512_s18, %s2512_s18 }
   0xd   :  { %p2519_p6 = por %p2518_p5, %p2517_p4 }
   0xf   :  { %p2520_p7 = pnand %p2519_p6, %p2513_p3 }
  0x11   :  { %2523 = shalt.err (!%p2520_p7)
}
  0x12   :  { %s2599_s19 = smov 128   ;;  %s2600_s20 = smov 8  }
  0x13   :  { %36 = dma.hbm_to_vmem [thread:$0]  %s3189_s1, 6144, %s31_s10, [#allocation5], %s2599_s19, %s2599_s19, %s2600_s20  }
  0x14   :  { %s2601_s23 = smov [#allocation7]   ;;  %s2524_s27 = scalar_lea.hbm %s3190_s2, 4096 }
  0x15   :  { %s42_s24 = sshll.u32 %s2601_s23, 4  ;;  %p2525_p8 = scmp.ne.s32.totalorder %s3190_s2, %s2524_s27  ;;  %s43_s24 = int_to_ptr.vmem [resolvable:$true] %s42_s24 }
  0x16   :  { %p2528_p9 = scmp.lt.u32.totalorder %s2524_s27, %s3190_s2 }
  0x18   :  { %p2530_p10 = pnand %p2528_p9, %p2525_p8 }
  0x1a   :  { %2533 = shalt.err (!%p2530_p10)
}
  0x1b   :  { %s2534_s12 = scalar_lea.vmem %s43_s24, 4096  ;;  %p2539_p12 = scmp.lt.s32.totalorder %s43_s24, %s43_s24 }
  0x1c   :  { %p2535_p11 = scmp.ne.s32.totalorder %s43_s24, %s2534_s12  ;;  %p2540_p13 = scmp.lt.s32.totalorder %s2534_s12, %s2534_s12 }
  0x1e   :  { %p2541_p0 = por %p2540_p13, %p2539_p12 }
  0x20   :  { %p2542_p1 = pnand %p2541_p0, %p2535_p11 }
  0x22   :  { %2545 = shalt.err (!%p2542_p1)
}
  0x23   :  { %48 = dma.hbm_to_vmem [thread:$0]  %s3190_s2, 4096, %s43_s24, [#allocation8], %s2599_s19, %s2599_s19, %s2600_s20  }
  0x24   :  { %2590 = dma.done.wait [#allocation5], 6144  }
  0x25   :  { %2591 = vsyncadd [#allocation5], 4294961152 }
  0x26   :  { %2592 = dma.done.wait [#allocation8], 4096  }
  0x27   :  { %2593 = vsyncadd [#allocation8], 4294963200  ;;  %v2278_v0 = vld [vmem:[#allocation7 + $0x4] ss:$8 sps:$4 sm:$0xff]   ;;  %v2280_v1 = vld [vmem:[#allocation7] ss:$8 sps:$4 sm:$0xff]  }
  0x28   :  { %566 = vmatprep.subr.bf16.mxu0 %v2278_v0  ;;  %v2281_v2 = vld [vmem:[#allocation7 + $0x14] ss:$8 sps:$4 sm:$0xff]   ;;  %v2283_v3 = vld [vmem:[#allocation7 + $0x10] ss:$8 sps:$4 sm:$0xff]   ;;  %v2284_v4 = vld [vmem:[#allocation7 + $0x24] ss:$8 sps:$4 sm:$0xff]  }
  0x29   :  { %567 = vmatpush1.bf16.msra.mxu0 %v2280_v1  ;;  %v2286_v5 = vld [vmem:[#allocation7 + $0x20] ss:$8 sps:$4 sm:$0xff]   ;;  %v2287_v6 = vld [vmem:[#allocation7 + $0x34] ss:$8 sps:$4 sm:$0xff]   ;;  %v2289_v7 = vld [vmem:[#allocation7 + $0x30] ss:$8 sps:$4 sm:$0xff]  }
  0x2a   :  { %568 = vmatprep.subr.bf16.mxu0 %v2281_v2  ;;  %v2290_v8 = vld [vmem:[#allocation7 + $0x44] ss:$8 sps:$4 sm:$0xff]   ;;  %v2292_v9 = vld [vmem:[#allocation7 + $0x40] ss:$8 sps:$4 sm:$0xff]   ;;  %v2293_v10 = vld [vmem:[#allocation7 + $0x54] ss:$8 sps:$4 sm:$0xff]  }
  0x2b   :  { %v2295_v11 = vld [vmem:[#allocation7 + $0x50] ss:$8 sps:$4 sm:$0xff]   ;;  %v2296_v12 = vld [vmem:[#allocation7 + $0x64] ss:$8 sps:$4 sm:$0xff]   ;;  %v2298_v14 = vld [vmem:[#allocation7 + $0x60] ss:$8 sps:$4 sm:$0xff]  }
  0x2c   :  { %v2328_v13 = vld [vmem:[#allocation4 + $0x4] ss:$8 sps:$4 sm:$0xff]   ;;  %v2299_v15 = vld [vmem:[#allocation7 + $0x74] ss:$8 sps:$4 sm:$0xff]   ;;  %v2301_v16 = vld [vmem:[#allocation7 + $0x70] ss:$8 sps:$4 sm:$0xff]  }
  0x2d   :  { %569 = vmatpush1.bf16.msra.mxu0 %v2283_v3  ;;  %598 = vmatprep.mubr.bf16.mxu0 %v2328_v13  ;;  %v2302_v17 = vld [vmem:[#allocation7 + $0x84] ss:$8 sps:$4 sm:$0xff]   ;;  %v2304_v18 = vld [vmem:[#allocation7 + $0x80] ss:$8 sps:$4 sm:$0xff]   ;;  %v2305_v19 = vld [vmem:[#allocation7 + $0x94] ss:$8 sps:$4 sm:$0xff]  }
  0x2e   :  { %570 = vmatprep.subr.bf16.mxu0 %v2284_v4  ;;  %v2307_v20 = vld [vmem:[#allocation7 + $0x90] ss:$8 sps:$4 sm:$0xff]   ;;  %v2308_v21 = vld [vmem:[#allocation7 + $0xa4] ss:$8 sps:$4 sm:$0xff]   ;;  %v2310_v22 = vld [vmem:[#allocation7 + $0xa0] ss:$8 sps:$4 sm:$0xff]  }
  0x2f   :  { %v2311_v23 = vld [vmem:[#allocation7 + $0xb4] ss:$8 sps:$4 sm:$0xff]   ;;  %v2313_v24 = vld [vmem:[#allocation7 + $0xb0] ss:$8 sps:$4 sm:$0xff]   ;;  %v2314_v25 = vld [vmem:[#allocation7 + $0xc4] ss:$8 sps:$4 sm:$0xff]  }
  0x30   :  { %v2316_v26 = vld [vmem:[#allocation7 + $0xc0] ss:$8 sps:$4 sm:$0xff]   ;;  %v2317_v27 = vld [vmem:[#allocation7 + $0xd4] ss:$8 sps:$4 sm:$0xff]   ;;  %v2319_v28 = vld [vmem:[#allocation7 + $0xd0] ss:$8 sps:$4 sm:$0xff]  }
  0x31   :  { %571 = vmatpush1.bf16.msra.mxu0 %v2286_v5  ;;  %v2320_v29 = vld [vmem:[#allocation7 + $0xe4] ss:$8 sps:$4 sm:$0xff]   ;;  %v2322_v30 = vld [vmem:[#allocation7 + $0xe0] ss:$8 sps:$4 sm:$0xff]   ;;  %v2323_v31 = vld [vmem:[#allocation7 + $0xf4] ss:$8 sps:$4 sm:$0xff]  }
  0x32   :  { %572 = vmatprep.subr.bf16.mxu0 %v2287_v6  ;;  %v2325_v32 = vld [vmem:[#allocation7 + $0xf0] ss:$8 sps:$4 sm:$0xff]   ;;  %v2326_v33 = vld [vmem:[#allocation4] ss:$8 sps:$4 sm:$0xff]   ;;  %v2329_v34 = vld [vmem:[#allocation4 + $0x14] ss:$8 sps:$4 sm:$0xff]  }
  0x33   :  { %v2331_v35 = vld [vmem:[#allocation4 + $0x10] ss:$8 sps:$4 sm:$0xff]   ;;  %v2332_v36 = vld [vmem:[#allocation4 + $0x24] ss:$8 sps:$4 sm:$0xff]   ;;  %v2334_v37 = vld [vmem:[#allocation4 + $0x20] ss:$8 sps:$4 sm:$0xff]  }
  0x34   :  { %v2335_v38 = vld [vmem:[#allocation4 + $0x34] ss:$8 sps:$4 sm:$0xff]   ;;  %v2337_v39 = vld [vmem:[#allocation4 + $0x30] ss:$8 sps:$4 sm:$0xff]   ;;  %v2338_v40 = vld [vmem:[#allocation4 + $0x44] ss:$8 sps:$4 sm:$0xff]  }
  0x35   :  { %573 = vmatpush1.bf16.msra.mxu0 %v2289_v7  ;;  %v2340_v41 = vld [vmem:[#allocation4 + $0x40] ss:$8 sps:$4 sm:$0xff]   ;;  %v2341_v42 = vld [vmem:[#allocation4 + $0x54] ss:$8 sps:$4 sm:$0xff]   ;;  %v2343_v43 = vld [vmem:[#allocation4 + $0x50] ss:$8 sps:$4 sm:$0xff]  }
  0x36   :  { %574 = vmatprep.subr.bf16.mxu0 %v2290_v8  ;;  %v2344_v44 = vld [vmem:[#allocation4 + $0x64] ss:$8 sps:$4 sm:$0xff]   ;;  %v2346_v45 = vld [vmem:[#allocation4 + $0x60] ss:$8 sps:$4 sm:$0xff]   ;;  %v2347_v46 = vld [vmem:[#allocation4 + $0x74] ss:$8 sps:$4 sm:$0xff]  }
  0x37   :  { %v2349_v47 = vld [vmem:[#allocation4 + $0x70] ss:$8 sps:$4 sm:$0xff]   ;;  %v2350_v48 = vld [vmem:[#allocation4 + $0x84] ss:$8 sps:$4 sm:$0xff]   ;;  %v2352_v57 = vld [vmem:[#allocation4 + $0x80] ss:$8 sps:$4 sm:$0xff]  }
  0x38   :  { %v887_v49 = vld [vmem:[%s3192_s4] sm:$0xff]  ;;  %v888_v50 = vld [vmem:[%s3192_s4 + $0x8] sm:$0xff]  ;;  %v889_v51 = vld [vmem:[%s3192_s4 + $0x10] sm:$0xff] }
  0x39   :  { %575 = vmatpush1.bf16.msra.mxu0 %v2292_v9  ;;  %v2177_v52 = vpack.c.bf16 %v888_v50, %v887_v49  ;;  %v890_v53 = vld [vmem:[%s3192_s4 + $0x18] sm:$0xff]  ;;  %v891_v55 = vld [vmem:[%s3192_s4 + $0x20] sm:$0xff]  ;;  %v892_v56 = vld [vmem:[%s3192_s4 + $0x28] sm:$0xff] }
  0x3a   :  { %576 = vmatprep.subr.bf16.mxu0 %v2293_v10  ;;  %v2181_v54 = vpack.c.bf16 %v890_v53, %v889_v51  ;;  %v2353_v58 = vld [vmem:[#allocation4 + $0x94] ss:$8 sps:$4 sm:$0xff]   ;;  %v2185_v59 = vpack.c.bf16 %v892_v56, %v891_v55  ;;  %v2355_v63 = vld [vmem:[#allocation4 + $0x90] ss:$8 sps:$4 sm:$0xff]   ;;  %v2356_v0 = vld [vmem:[#allocation4 + $0xa4] ss:$8 sps:$4 sm:$0xff]  }
  0x3b   :  { %2178 = vmatprep.subr.bf16.mxu1 %v2177_v52  ;;  %v893_v60 = vld [vmem:[%s3192_s4 + $0x30] sm:$0xff]  ;;  %v894_v61 = vld [vmem:[%s3192_s4 + $0x38] sm:$0xff]  ;;  %v2358_v1 = vld [vmem:[#allocation4 + $0xa0] ss:$8 sps:$4 sm:$0xff]  }
  0x3c   :  { %2180 = vmatpush3.bf16.msra.mxu1 %v2177_v52  ;;  %v2189_v62 = vpack.c.bf16 %v894_v61, %v893_v60  ;;  %v2359_v2 = vld [vmem:[#allocation4 + $0xb4] ss:$8 sps:$4 sm:$0xff]   ;;  %v895_v3 = vld [vmem:[%s3192_s4 + $0x40] sm:$0xff]  ;;  %v896_v4 = vld [vmem:[%s3192_s4 + $0x48] sm:$0xff] }
  0x3d   :  { %577 = vmatpush1.bf16.msra.mxu0 %v2295_v11  ;;  %2182 = vmatprep.subr.bf16.mxu1 %v2181_v54  ;;  %v2193_v5 = vpack.c.bf16 %v896_v4, %v895_v3  ;;  %v2361_v6 = vld [vmem:[#allocation4 + $0xb0] ss:$8 sps:$4 sm:$0xff]   ;;  %v2362_v7 = vld [vmem:[#allocation4 + $0xc4] ss:$8 sps:$4 sm:$0xff]  }
  0x3e   :  { %578 = vmatprep.subr.bf16.mxu0 %v2296_v12  ;;  %v897_v8 = vld [vmem:[%s3192_s4 + $0x50] sm:$0xff]  ;;  %v898_v9 = vld [vmem:[%s3192_s4 + $0x58] sm:$0xff]  ;;  %v899_v11 = vld [vmem:[%s3192_s4 + $0x60] sm:$0xff] }
  0x3f   :  { %v2197_v10 = vpack.c.bf16 %v898_v9, %v897_v8  ;;  %v900_v12 = vld [vmem:[%s3192_s4 + $0x68] sm:$0xff] }
  0x40   :  { %2184 = vmatpush3.bf16.msra.mxu1 %v2181_v54  ;;  %v2201_v13 = vpack.c.bf16 %v900_v12, %v899_v11 }
  0x41   :  { %579 = vmatpush1.bf16.msra.mxu0 %v2298_v14  ;;  %2186 = vmatprep.subr.bf16.mxu1 %v2185_v59  ;;  %v2364_v14 = vld [vmem:[#allocation4 + $0xc0] ss:$8 sps:$4 sm:$0xff]  }
  0x42   :  { %580 = vmatprep.subr.bf16.mxu0 %v2299_v15  ;;  %v2365_v15 = vld [vmem:[#allocation4 + $0xd4] ss:$8 sps:$4 sm:$0xff]  }
  0x44   :  { %2188 = vmatpush3.bf16.msra.mxu1 %v2185_v59 }
  0x45   :  { %581 = vmatpush1.bf16.msra.mxu0 %v2301_v16  ;;  %2190 = vmatprep.subr.bf16.mxu1 %v2189_v62  ;;  %v901_v16 = vld [vmem:[%s3192_s4 + $0x70] sm:$0xff] }
  0x46   :  { %582 = vmatprep.subr.bf16.mxu0 %v2302_v17  ;;  %v902_v17 = vld [vmem:[%s3192_s4 + $0x78] sm:$0xff] }
  0x48   :  { %2192 = vmatpush3.bf16.msra.mxu1 %v2189_v62 }
  0x49   :  { %583 = vmatpush1.bf16.msra.mxu0 %v2304_v18  ;;  %2194 = vmatprep.subr.bf16.mxu1 %v2193_v5  ;;  %v2205_v18 = vpack.c.bf16 %v902_v17, %v901_v16 }
  0x4a   :  { %584 = vmatprep.subr.bf16.mxu0 %v2305_v19  ;;  %v2367_v19 = vld [vmem:[#allocation4 + $0xd0] ss:$8 sps:$4 sm:$0xff]  }
  0x4c   :  { %2196 = vmatpush3.bf16.msra.mxu1 %v2193_v5 }
  0x4d   :  { %585 = vmatpush1.bf16.msra.mxu0 %v2307_v20  ;;  %2198 = vmatprep.subr.bf16.mxu1 %v2197_v10  ;;  %v2368_v20 = vld [vmem:[#allocation4 + $0xe4] ss:$8 sps:$4 sm:$0xff]  }
  0x4e   :  { %586 = vmatprep.subr.bf16.mxu0 %v2308_v21  ;;  %v2370_v21 = vld [vmem:[#allocation4 + $0xe0] ss:$8 sps:$4 sm:$0xff]  }
  0x50   :  { %2200 = vmatpush3.bf16.msra.mxu1 %v2197_v10 }
  0x51   :  { %587 = vmatpush1.bf16.msra.mxu0 %v2310_v22  ;;  %2202 = vmatprep.subr.bf16.mxu1 %v2201_v13  ;;  %v2371_v22 = vld [vmem:[#allocation4 + $0xf4] ss:$8 sps:$4 sm:$0xff]  }
  0x52   :  { %588 = vmatprep.subr.bf16.mxu0 %v2311_v23  ;;  %v2373_v23 = vld [vmem:[#allocation4 + $0xf0] ss:$8 sps:$4 sm:$0xff]  }
  0x54   :  { %2204 = vmatpush3.bf16.msra.mxu1 %v2201_v13 }
  0x55   :  { %589 = vmatpush1.bf16.msra.mxu0 %v2313_v24  ;;  %2206 = vmatprep.subr.bf16.mxu1 %v2205_v18  ;;  %v2374_v24 = vld [vmem:[#allocation4 + $0x104] ss:$8 sps:$4 sm:$0xff]  }
  0x56   :  { %590 = vmatprep.subr.bf16.mxu0 %v2314_v25  ;;  %v2376_v25 = vld [vmem:[#allocation4 + $0x100] ss:$8 sps:$4 sm:$0xff]  }
  0x58   :  { %2208 = vmatpush3.bf16.msra.mxu1 %v2205_v18 }
  0x59   :  { %591 = vmatpush1.bf16.msra.mxu0 %v2316_v26  ;;  %v2377_v26 = vld [vmem:[#allocation4 + $0x114] ss:$8 sps:$4 sm:$0xff]  }
  0x5a   :  { %592 = vmatprep.subr.bf16.mxu0 %v2317_v27  ;;  %v2379_v27 = vld [vmem:[#allocation4 + $0x110] ss:$8 sps:$4 sm:$0xff]  }
  0x5d   :  { %593 = vmatpush1.bf16.msra.mxu0 %v2319_v28  ;;  %v2380_v28 = vld [vmem:[#allocation4 + $0x124] ss:$8 sps:$4 sm:$0xff]  }
  0x5e   :  { %594 = vmatprep.subr.bf16.mxu0 %v2320_v29  ;;  %v2382_v29 = vld [vmem:[#allocation4 + $0x120] ss:$8 sps:$4 sm:$0xff]  }
  0x61   :  { %595 = vmatpush1.bf16.msra.mxu0 %v2322_v30  ;;  %v2383_v30 = vld [vmem:[#allocation4 + $0x134] ss:$8 sps:$4 sm:$0xff]  }
  0x62   :  { %596 = vmatprep.subr.bf16.mxu0 %v2323_v31  ;;  %v2385_v31 = vld [vmem:[#allocation4 + $0x130] ss:$8 sps:$4 sm:$0xff]  }
  0x65   :  { %597 = vmatpush1.bf16.msra.mxu0 %v2325_v32  ;;  %v2386_v32 = vld [vmem:[#allocation4 + $0x144] ss:$8 sps:$4 sm:$0xff]  }
  0x68   :  { %599 = vmatmul.mubr.bf16.vlgmr.msra.gmra.mrb[0].mxu0 %v2326_v33  ;;  %v2388_v33 = vld [vmem:[#allocation4 + $0x140] ss:$8 sps:$4 sm:$0xff]  }
  0x69   :  { %608 = vmatprep.mubr.bf16.mxu0 %v2329_v34  ;;  %v2389_v34 = vld [vmem:[#allocation4 + $0x154] ss:$8 sps:$4 sm:$0xff]  }
  0x70   :  { %609 = vmatmul.mubr.bf16.gmra.mrb[4].mxu0 %v2331_v35  ;;  %v2391_v35 = vld [vmem:[#allocation4 + $0x150] ss:$8 sps:$4 sm:$0xff]  }
  0x71   :  { %618 = vmatprep.mubr.bf16.mxu0 %v2332_v36  ;;  %v2392_v36 = vld [vmem:[#allocation4 + $0x164] ss:$8 sps:$4 sm:$0xff]  }
  0x78   :  { %619 = vmatmul.mubr.bf16.gmra.mrb[8].mxu0 %v2334_v37  ;;  %v2394_v37 = vld [vmem:[#allocation4 + $0x160] ss:$8 sps:$4 sm:$0xff]  }
  0x79   :  { %628 = vmatprep.mubr.bf16.mxu0 %v2335_v38  ;;  %v2395_v38 = vld [vmem:[#allocation4 + $0x174] ss:$8 sps:$4 sm:$0xff]  }
  0x80   :  { %629 = vmatmul.mubr.bf16.gmra.mrb[12].mxu0 %v2337_v39  ;;  %v2397_v39 = vld [vmem:[#allocation4 + $0x170] ss:$8 sps:$4 sm:$0xff]  }
  0x81   :  { %638 = vmatprep.mubr.bf16.mxu0 %v2338_v40  ;;  %v156_v40 = vlaneseq }
  0x88   :  { %639 = vmatmul.mubr.bf16.gmra.mrb[16].mxu0 %v2340_v41  ;;  %v2731_v41 = vshrl.u32 %v156_v40, 7 }
  0x89   :  { %648 = vmatprep.mubr.bf16.mxu0 %v2341_v42 }
  0x8a   :  { %v162_v42 = vsub.s32 1, %v2731_v41 }
  0x90   :  { %649 = vmatmul.mubr.bf16.gmra.mrb[20].mxu0 %v2343_v43  ;;  %v154_v43 = vld [vmem:[%s3191_s3] sm:$0x3] }
  0x91   :  { %658 = vmatprep.mubr.bf16.mxu0 %v2344_v44  ;;  %v158_v44 = vsub.s32 0, %v2731_v41 }
  0x98   :  { %659 = vmatmul.mubr.bf16.gmra.mrb[24].mxu0 %v2346_v45  ;;  %v2738_v45 = vrot.slane %v154_v43, %v162_v42 }
  0x99   :  { %668 = vmatprep.mubr.bf16.mxu0 %v2347_v46  ;;  %v2740_v46 = vrot.slane %v154_v43, %v158_v44 }
  0xa0   :  { %669 = vmatmul.mubr.bf16.gmra.mrb[28].mxu0 %v2349_v47 }
  0xa1   :  { %678 = vmatprep.mubr.bf16.mxu0 %v2350_v48 }
  0xa8   :  { %679 = vmatmul.mubr.bf16.gmra.mrb[32].mxu0 %v2352_v57 }
  0xa9   :  { %688 = vmatprep.mubr.bf16.mxu0 %v2353_v58 }
  0xb0   :  { %689 = vmatmul.mubr.bf16.gmra.mrb[36].mxu0 %v2355_v63 }
  0xb1   :  { %698 = vmatprep.mubr.bf16.mxu0 %v2356_v0 }
  0xb8   :  { %699 = vmatmul.mubr.bf16.gmra.mrb[40].mxu0 %v2358_v1 }
  0xb9   :  { %708 = vmatprep.mubr.bf16.mxu0 %v2359_v2 }
  0xc0   :  { %709 = vmatmul.mubr.bf16.gmra.mrb[44].mxu0 %v2361_v6 }
  0xc1   :  { %718 = vmatprep.mubr.bf16.mxu0 %v2362_v7 }
  0xc8   :  { %719 = vmatmul.mubr.bf16.gmra.mrb[48].mxu0 %v2364_v14 }
  0xc9   :  { %728 = vmatprep.mubr.bf16.mxu0 %v2365_v15 }
  0xd0   :  { %729 = vmatmul.mubr.bf16.gmra.mrb[52].mxu0 %v2367_v19 }
  0xd1   :  { %738 = vmatprep.mubr.bf16.mxu0 %v2368_v20 }
  0xd8   :  { %739 = vmatmul.mubr.bf16.gmra.mrb[56].mxu0 %v2370_v21 }
  0xd9   :  { %748 = vmatprep.mubr.bf16.mxu0 %v2371_v22 }
  0xe0   :  { %749 = vmatmul.mubr.bf16.gmra.mrb[60].mxu0 %v2373_v23 }
  0xe1   :  { %758 = vmatprep.mubr.bf16.mxu0 %v2374_v24 }
  0xe8   :  { %759 = vmatmul.mubr.bf16.gmra.mrb[64].mxu0 %v2376_v25 }
  0xe9   :  { %768 = vmatprep.mubr.bf16.mxu0 %v2377_v26 }
  0xf0   :  { %769 = vmatmul.mubr.bf16.gmra.mrb[68].mxu0 %v2379_v27 }
  0xf1   :  { %778 = vmatprep.mubr.bf16.mxu0 %v2380_v28 }
  0xf8   :  { %779 = vmatmul.mubr.bf16.gmra.mrb[72].mxu0 %v2382_v29 }
  0xf9   :  { %788 = vmatprep.mubr.bf16.mxu0 %v2383_v30 }
 0x100   :  { %789 = vmatmul.mubr.bf16.gmra.mrb[76].mxu0 %v2385_v31 }
 0x101   :  { %798 = vmatprep.mubr.bf16.mxu0 %v2386_v32 }
 0x108   :  { %799 = vmatmul.mubr.bf16.gmra.mrb[80].mxu0 %v2388_v33 }
 0x109   :  { %808 = vmatprep.mubr.bf16.mxu0 %v2389_v34 }
 0x110   :  { %809 = vmatmul.mubr.bf16.gmra.mrb[84].mxu0 %v2391_v35 }
 0x111   :  { %818 = vmatprep.mubr.bf16.mxu0 %v2392_v36 }
 0x118   :  { %819 = vmatmul.mubr.bf16.gmra.mrb[88].mxu0 %v2394_v37 }
 0x119   :  { %828 = vmatprep.mubr.bf16.mxu0 %v2395_v38 }
 0x120   :  { %829 = vmatmul.mubr.bf16.gmra.mrb[92].mxu0 %v2397_v39 }
 0x13b   :  { %v600_v47 = vpop.f32.mrb[0].mxu0 }
 0x13c   :  { %v602_v48 = vpop.f32.mrb[1].mxu0  ;;  %v2744_v51 = vadd.f32 %v600_v47, %v2740_v46 }
 0x13d   :  { %v603_v49 = vadd.f32 %v602_v48, %v2738_v45  ;;  %v604_v50 = vpop.f32.mrb[2].mxu0 }
 0x13e   :  { %v2747_v52 = vadd.f32 %v604_v50, %v2740_v46  ;;  %v606_v53 = vpop.f32.mrb[3].mxu0 }
 0x13f   :  { %2398 = vtanh.f32 %v603_v49  ;;  %v607_v54 = vadd.f32 %v606_v53, %v2738_v45 }
 0x140   :  { %v2211_v55 = vpack.c.bf16 %v2747_v52, %v2744_v51 }
 0x141   :  { %2400 = vtanh.f32 %v607_v54 }
 0x143   :  { %v610_v56 = vpop.f32.mrb[4].mxu0 }
 0x144   :  { %v612_v57 = vpop.f32.mrb[5].mxu0  ;;  %v2754_v60 = vadd.f32 %v610_v56, %v2740_v46 }
 0x145   :  { %v613_v58 = vadd.f32 %v612_v57, %v2738_v45  ;;  %v614_v59 = vpop.f32.mrb[6].mxu0 }
 0x146   :  { %v2757_v61 = vadd.f32 %v614_v59, %v2740_v46  ;;  %v616_v62 = vpop.f32.mrb[7].mxu0 }
 0x147   :  { %2402 = vtanh.f32 %v613_v58  ;;  %v617_v63 = vadd.f32 %v616_v62, %v2738_v45 }
 0x148   :  { %v2215_v0 = vpack.c.bf16 %v2757_v61, %v2754_v60 }
 0x149   :  { %v2399_v1 = vpop.eup %2398  ;;  %2404 = vtanh.f32 %v617_v63 }
 0x14a   :  { %2070 = vmatprep.mubr.f32.mxu1 %v2399_v1 }
 0x14b   :  { %v2401_v2 = vpop.eup %2400  ;;  %v620_v3 = vpop.f32.mrb[8].mxu0 }
 0x14c   :  { %v622_v4 = vpop.f32.mrb[9].mxu0  ;;  %2071 = vmatmul.mubr.f32.vlgmr.msra.gmra.mrb[0].mxu1 %v2401_v2  ;;  %v2764_v7 = vadd.f32 %v620_v3, %v2740_v46 }
 0x14d   :  { %v623_v5 = vadd.f32 %v622_v4, %v2738_v45  ;;  %v624_v6 = vpop.f32.mrb[10].mxu0 }
 0x14e   :  { %v2767_v8 = vadd.f32 %v624_v6, %v2740_v46  ;;  %v626_v9 = vpop.f32.mrb[11].mxu0 }
 0x14f   :  { %2406 = vtanh.f32 %v623_v5  ;;  %v627_v10 = vadd.f32 %v626_v9, %v2738_v45 }
 0x150   :  { %v2219_v11 = vpack.c.bf16 %v2767_v8, %v2764_v7 }
 0x151   :  { %v2403_v12 = vpop.eup %2402  ;;  %2408 = vtanh.f32 %v627_v10 }
 0x152   :  { %2073 = vmatprep.mubr.f32.mxu1 %v2403_v12 }
 0x153   :  { %v2405_v13 = vpop.eup %2404  ;;  %v630_v14 = vpop.f32.mrb[12].mxu0 }
 0x154   :  { %v632_v15 = vpop.f32.mrb[13].mxu0  ;;  %2074 = vmatmul.mubr.f32.gmra.mrb[2].mxu1 %v2405_v13  ;;  %v2774_v18 = vadd.f32 %v630_v14, %v2740_v46 }
 0x155   :  { %v633_v16 = vadd.f32 %v632_v15, %v2738_v45  ;;  %v634_v17 = vpop.f32.mrb[14].mxu0 }
 0x156   :  { %v2777_v19 = vadd.f32 %v634_v17, %v2740_v46  ;;  %v636_v20 = vpop.f32.mrb[15].mxu0 }
 0x157   :  { %2410 = vtanh.f32 %v633_v16  ;;  %v637_v21 = vadd.f32 %v636_v20, %v2738_v45 }
 0x158   :  { %v2223_v22 = vpack.c.bf16 %v2777_v19, %v2774_v18 }
 0x159   :  { %v2407_v23 = vpop.eup %2406  ;;  %2412 = vtanh.f32 %v637_v21 }
 0x15a   :  { %2076 = vmatprep.mubr.f32.mxu1 %v2407_v23 }
 0x15b   :  { %v2409_v24 = vpop.eup %2408  ;;  %v640_v25 = vpop.f32.mrb[16].mxu0 }
 0x15c   :  { %v642_v26 = vpop.f32.mrb[17].mxu0  ;;  %2077 = vmatmul.mubr.f32.gmra.mrb[4].mxu1 %v2409_v24  ;;  %v2784_v29 = vadd.f32 %v640_v25, %v2740_v46 }
 0x15d   :  { %v643_v27 = vadd.f32 %v642_v26, %v2738_v45  ;;  %v644_v28 = vpop.f32.mrb[18].mxu0 }
 0x15e   :  { %v2787_v30 = vadd.f32 %v644_v28, %v2740_v46  ;;  %v646_v31 = vpop.f32.mrb[19].mxu0 }
 0x15f   :  { %2414 = vtanh.f32 %v643_v27  ;;  %v647_v32 = vadd.f32 %v646_v31, %v2738_v45 }
 0x160   :  { %v2227_v33 = vpack.c.bf16 %v2787_v30, %v2784_v29 }
 0x161   :  { %v2411_v34 = vpop.eup %2410  ;;  %2416 = vtanh.f32 %v647_v32 }
 0x162   :  { %2079 = vmatprep.mubr.f32.mxu1 %v2411_v34 }
 0x163   :  { %v2413_v35 = vpop.eup %2412  ;;  %v650_v36 = vpop.f32.mrb[20].mxu0 }
 0x164   :  { %v652_v37 = vpop.f32.mrb[21].mxu0  ;;  %2080 = vmatmul.mubr.f32.gmra.mrb[6].mxu1 %v2413_v35  ;;  %v2794_v40 = vadd.f32 %v650_v36, %v2740_v46 }
 0x165   :  { %v653_v38 = vadd.f32 %v652_v37, %v2738_v45  ;;  %v654_v39 = vpop.f32.mrb[22].mxu0 }
 0x166   :  { %v2797_v42 = vadd.f32 %v654_v39, %v2740_v46  ;;  %v656_v43 = vpop.f32.mrb[23].mxu0 }
 0x167   :  { %2418 = vtanh.f32 %v653_v38  ;;  %v657_v44 = vadd.f32 %v656_v43, %v2738_v45 }
 0x168   :  { %v2231_v47 = vpack.c.bf16 %v2797_v42, %v2794_v40 }
 0x169   :  { %v2415_v48 = vpop.eup %2414  ;;  %2420 = vtanh.f32 %v657_v44 }
 0x16a   :  { %2082 = vmatprep.mubr.f32.mxu1 %v2415_v48 }
 0x16b   :  { %v2417_v49 = vpop.eup %2416  ;;  %v660_v50 = vpop.f32.mrb[24].mxu0 }
 0x16c   :  { %v662_v53 = vpop.f32.mrb[25].mxu0  ;;  %2083 = vmatmul.mubr.f32.gmra.mrb[8].mxu1 %v2417_v49  ;;  %v2804_v57 = vadd.f32 %v660_v50, %v2740_v46 }
 0x16d   :  { %v663_v54 = vadd.f32 %v662_v53, %v2738_v45  ;;  %v664_v56 = vpop.f32.mrb[26].mxu0 }
 0x16e   :  { %v2807_v58 = vadd.f32 %v664_v56, %v2740_v46  ;;  %v666_v59 = vpop.f32.mrb[27].mxu0 }
 0x16f   :  { %2422 = vtanh.f32 %v663_v54  ;;  %v667_v62 = vadd.f32 %v666_v59, %v2738_v45 }
 0x170   :  { %v2235_v63 = vpack.c.bf16 %v2807_v58, %v2804_v57 }
 0x171   :  { %v2419_v1 = vpop.eup %2418  ;;  %2424 = vtanh.f32 %v667_v62 }
 0x172   :  { %2085 = vmatprep.mubr.f32.mxu1 %v2419_v1 }
 0x173   :  { %v2421_v2 = vpop.eup %2420  ;;  %v670_v3 = vpop.f32.mrb[28].mxu0 }
 0x174   :  { %v672_v4 = vpop.f32.mrb[29].mxu0  ;;  %2086 = vmatmul.mubr.f32.gmra.mrb[10].mxu1 %v2421_v2  ;;  %v2814_v9 = vadd.f32 %v670_v3, %v2740_v46 }
 0x175   :  { %v673_v5 = vadd.f32 %v672_v4, %v2738_v45  ;;  %v674_v6 = vpop.f32.mrb[30].mxu0 }
 0x176   :  { %v2817_v10 = vadd.f32 %v674_v6, %v2740_v46  ;;  %v676_v12 = vpop.f32.mrb[31].mxu0 }
 0x177   :  { %2426 = vtanh.f32 %v673_v5  ;;  %v677_v13 = vadd.f32 %v676_v12, %v2738_v45 }
 0x178   :  { %v2239_v14 = vpack.c.bf16 %v2817_v10, %v2814_v9 }
 0x179   :  { %v2423_v15 = vpop.eup %2422  ;;  %2428 = vtanh.f32 %v677_v13 }
 0x17a   :  { %2088 = vmatprep.mubr.f32.mxu1 %v2423_v15 }
 0x17b   :  { %v2425_v16 = vpop.eup %2424  ;;  %v680_v17 = vpop.f32.mrb[32].mxu0 }
 0x17c   :  { %v682_v20 = vpop.f32.mrb[33].mxu0  ;;  %2089 = vmatmul.mubr.f32.gmra.mrb[12].mxu1 %v2425_v16  ;;  %v681_v24 = vadd.f32 %v680_v17, %v2740_v46 }
 0x17d   :  { %v683_v21 = vadd.f32 %v682_v20, %v2738_v45  ;;  %v684_v23 = vpop.f32.mrb[34].mxu0 }
 0x17e   :  { %v685_v25 = vadd.f32 %v684_v23, %v2740_v46  ;;  %v686_v26 = vpop.f32.mrb[35].mxu0 }
 0x17f   :  { %2430 = vtanh.f32 %v683_v21  ;;  %v687_v27 = vadd.f32 %v686_v26, %v2738_v45 }
 0x180   :  { %v2209_v28 = vpack.c.bf16 %v685_v25, %v681_v24 }
 0x181   :  { %v2427_v31 = vpop.eup %2426  ;;  %2432 = vtanh.f32 %v687_v27 }
 0x182   :  { %2091 = vmatprep.mubr.f32.mxu1 %v2427_v31  ;;  %2210 = vmatprep.subr.bf16.mxu1 %v2209_v28 }
 0x183   :  { %v2429_v32 = vpop.eup %2428  ;;  %v690_v34 = vpop.f32.mrb[36].mxu0  ;;  %2212 = vmatpush3.bf16.msra.mxu1 %v2211_v55 }
 0x184   :  { %v692_v35 = vpop.f32.mrb[37].mxu0  ;;  %2092 = vmatmul.mubr.f32.gmra.mrb[14].mxu1 %v2429_v32  ;;  %v691_v38 = vadd.f32 %v690_v34, %v2740_v46 }
 0x185   :  { %v693_v36 = vadd.f32 %v692_v35, %v2738_v45  ;;  %v694_v37 = vpop.f32.mrb[38].mxu0 }
 0x186   :  { %v695_v39 = vadd.f32 %v694_v37, %v2740_v46  ;;  %v696_v43 = vpop.f32.mrb[39].mxu0 }
 0x187   :  { %2434 = vtanh.f32 %v693_v36  ;;  %v697_v44 = vadd.f32 %v696_v43, %v2738_v45 }
 0x188   :  { %v2213_v48 = vpack.c.bf16 %v695_v39, %v691_v38 }
 0x189   :  { %v2431_v49 = vpop.eup %2430  ;;  %2436 = vtanh.f32 %v697_v44 }
 0x18a   :  { %2094 = vmatprep.mubr.f32.mxu1 %v2431_v49  ;;  %2214 = vmatprep.subr.bf16.mxu1 %v2213_v48 }
 0x18b   :  { %v2433_v51 = vpop.eup %2432  ;;  %v700_v52 = vpop.f32.mrb[40].mxu0  ;;  %2216 = vmatpush3.bf16.msra.mxu1 %v2215_v0 }
 0x18c   :  { %v702_v55 = vpop.f32.mrb[41].mxu0  ;;  %2095 = vmatmul.mubr.f32.gmra.mrb[16].mxu1 %v2433_v51  ;;  %v701_v54 = vadd.f32 %v700_v52, %v2740_v46 }
 0x18d   :  { %v703_v50 = vadd.f32 %v702_v55, %v2738_v45  ;;  %v704_v53 = vpop.f32.mrb[42].mxu0 }
 0x18e   :  { %v705_v56 = vadd.f32 %v704_v53, %v2740_v46  ;;  %v706_v59 = vpop.f32.mrb[43].mxu0 }
 0x18f   :  { %2438 = vtanh.f32 %v703_v50  ;;  %v707_v62 = vadd.f32 %v706_v59, %v2738_v45 }
 0x190   :  { %v2217_v1 = vpack.c.bf16 %v705_v56, %v701_v54 }
 0x191   :  { %v2435_v2 = vpop.eup %2434  ;;  %2440 = vtanh.f32 %v707_v62 }
 0x192   :  { %2097 = vmatprep.mubr.f32.mxu1 %v2435_v2  ;;  %2218 = vmatprep.subr.bf16.mxu1 %v2217_v1 }
 0x193   :  { %v2437_v60 = vpop.eup %2436  ;;  %v710_v61 = vpop.f32.mrb[44].mxu0  ;;  %2220 = vmatpush3.bf16.msra.mxu1 %v2219_v11 }
 0x194   :  { %v712_v0 = vpop.f32.mrb[45].mxu0  ;;  %2098 = vmatmul.mubr.f32.gmra.mrb[18].mxu1 %v2437_v60  ;;  %v711_v5 = vadd.f32 %v710_v61, %v2740_v46 }
 0x195   :  { %v713_v3 = vadd.f32 %v712_v0, %v2738_v45  ;;  %v714_v4 = vpop.f32.mrb[46].mxu0 }
 0x196   :  { %v715_v6 = vadd.f32 %v714_v4, %v2740_v46  ;;  %v716_v12 = vpop.f32.mrb[47].mxu0 }
 0x197   :  { %2442 = vtanh.f32 %v713_v3  ;;  %v717_v13 = vadd.f32 %v716_v12, %v2738_v45 }
 0x198   :  { %v2221_v15 = vpack.c.bf16 %v715_v6, %v711_v5 }
 0x199   :  { %v2439_v16 = vpop.eup %2438  ;;  %2444 = vtanh.f32 %v717_v13 }
 0x19a   :  { %2100 = vmatprep.mubr.f32.mxu1 %v2439_v16  ;;  %2222 = vmatprep.subr.bf16.mxu1 %v2221_v15 }
 0x19b   :  { %v2441_v7 = vpop.eup %2440  ;;  %v720_v8 = vpop.f32.mrb[48].mxu0  ;;  %2224 = vmatpush3.bf16.msra.mxu1 %v2223_v22 }
 0x19c   :  { %v722_v11 = vpop.f32.mrb[49].mxu0  ;;  %2101 = vmatmul.mubr.f32.gmra.mrb[20].mxu1 %v2441_v7  ;;  %v721_v21 = vadd.f32 %v720_v8, %v2740_v46 }
 0x19d   :  { %v723_v17 = vadd.f32 %v722_v11, %v2738_v45  ;;  %v724_v20 = vpop.f32.mrb[50].mxu0 }
 0x19e   :  { %v725_v23 = vadd.f32 %v724_v20, %v2740_v46  ;;  %v726_v24 = vpop.f32.mrb[51].mxu0 }
 0x19f   :  { %2446 = vtanh.f32 %v723_v17  ;;  %v727_v25 = vadd.f32 %v726_v24, %v2738_v45 }
 0x1a0   :  { %v2225_v26 = vpack.c.bf16 %v725_v23, %v721_v21 }
 0x1a1   :  { %v2443_v27 = vpop.eup %2442  ;;  %2448 = vtanh.f32 %v727_v25 }
 0x1a2   :  { %2103 = vmatprep.mubr.f32.mxu1 %v2443_v27  ;;  %2226 = vmatprep.subr.bf16.mxu1 %v2225_v26 }
 0x1a3   :  { %v2445_v18 = vpop.eup %2444  ;;  %v730_v19 = vpop.f32.mrb[52].mxu0  ;;  %2228 = vmatpush3.bf16.msra.mxu1 %v2227_v33 }
 0x1a4   :  { %v732_v22 = vpop.f32.mrb[53].mxu0  ;;  %2104 = vmatmul.mubr.f32.gmra.mrb[22].mxu1 %v2445_v18  ;;  %v731_v32 = vadd.f32 %v730_v19, %v2740_v46 }
 0x1a5   :  { %v733_v28 = vadd.f32 %v732_v22, %v2738_v45  ;;  %v734_v31 = vpop.f32.mrb[54].mxu0 }
 0x1a6   :  { %v735_v34 = vadd.f32 %v734_v31, %v2740_v46  ;;  %v736_v35 = vpop.f32.mrb[55].mxu0 }
 0x1a7   :  { %2450 = vtanh.f32 %v733_v28  ;;  %v737_v36 = vadd.f32 %v736_v35, %v2738_v45 }
 0x1a8   :  { %v2229_v37 = vpack.c.bf16 %v735_v34, %v731_v32 }
 0x1a9   :  { %v2447_v38 = vpop.eup %2446  ;;  %2452 = vtanh.f32 %v737_v36 }
 0x1aa   :  { %2106 = vmatprep.mubr.f32.mxu1 %v2447_v38  ;;  %2230 = vmatprep.subr.bf16.mxu1 %v2229_v37 }
 0x1ab   :  { %v2449_v29 = vpop.eup %2448  ;;  %v740_v30 = vpop.f32.mrb[56].mxu0  ;;  %2232 = vmatpush3.bf16.msra.mxu1 %v2231_v47 }
 0x1ac   :  { %v742_v33 = vpop.f32.mrb[57].mxu0  ;;  %2107 = vmatmul.mubr.f32.gmra.mrb[24].mxu1 %v2449_v29  ;;  %v741_v44 = vadd.f32 %v740_v30, %v2740_v46 }
 0x1ad   :  { %v743_v39 = vadd.f32 %v742_v33, %v2738_v45  ;;  %v744_v43 = vpop.f32.mrb[58].mxu0 }
 0x1ae   :  { %v745_v48 = vadd.f32 %v744_v43, %v2740_v46  ;;  %v746_v49 = vpop.f32.mrb[59].mxu0 }
 0x1af   :  { %2454 = vtanh.f32 %v743_v39  ;;  %v747_v51 = vadd.f32 %v746_v49, %v2738_v45 }
 0x1b0   :  { %v2233_v52 = vpack.c.bf16 %v745_v48, %v741_v44 }
 0x1b1   :  { %v2451_v55 = vpop.eup %2450  ;;  %2456 = vtanh.f32 %v747_v51 }
 0x1b2   :  { %2109 = vmatprep.mubr.f32.mxu1 %v2451_v55  ;;  %2234 = vmatprep.subr.bf16.mxu1 %v2233_v52 }
 0x1b3   :  { %v2453_v40 = vpop.eup %2452  ;;  %v750_v42 = vpop.f32.mrb[60].mxu0  ;;  %2236 = vmatpush3.bf16.msra.mxu1 %v2235_v63 }
 0x1b4   :  { %v752_v47 = vpop.f32.mrb[61].mxu0  ;;  %2110 = vmatmul.mubr.f32.gmra.mrb[26].mxu1 %v2453_v40  ;;  %v751_v54 = vadd.f32 %v750_v42, %v2740_v46 }
 0x1b5   :  { %v753_v50 = vadd.f32 %v752_v47, %v2738_v45  ;;  %v754_v53 = vpop.f32.mrb[62].mxu0 }
 0x1b6   :  { %v755_v56 = vadd.f32 %v754_v53, %v2740_v46  ;;  %v756_v59 = vpop.f32.mrb[63].mxu0 }
 0x1b7   :  { %2458 = vtanh.f32 %v753_v50  ;;  %v757_v62 = vadd.f32 %v756_v59, %v2738_v45 }
 0x1b8   :  { %v2237_v1 = vpack.c.bf16 %v755_v56, %v751_v54 }
 0x1b9   :  { %v2455_v2 = vpop.eup %2454  ;;  %2460 = vtanh.f32 %v757_v62 }
 0x1ba   :  { %2112 = vmatprep.mubr.f32.mxu1 %v2455_v2  ;;  %2238 = vmatprep.subr.bf16.mxu1 %v2237_v1 }
 0x1bb   :  { %v2457_v57 = vpop.eup %2456  ;;  %v760_v58 = vpop.f32.mrb[64].mxu0  ;;  %2240 = vmatpush3.bf16.msra.mxu1 %v2239_v14 }
 0x1bc   :  { %v762_v63 = vpop.f32.mrb[65].mxu0  ;;  %2113 = vmatmul.mubr.f32.gmra.mrb[28].mxu1 %v2457_v57  ;;  %v2880_v0 = vadd.f32 %v760_v58, %v2740_v46 }
 0x1bd   :  { %v763_v60 = vadd.f32 %v762_v63, %v2738_v45  ;;  %v764_v61 = vpop.f32.mrb[66].mxu0 }
 0x1be   :  { %v2883_v3 = vadd.f32 %v764_v61, %v2740_v46  ;;  %v766_v4 = vpop.f32.mrb[67].mxu0 }
 0x1bf   :  { %2462 = vtanh.f32 %v763_v60  ;;  %v767_v5 = vadd.f32 %v766_v4, %v2738_v45 }
 0x1c0   :  { %v2242_v6 = vpack.c.bf16 %v2883_v3, %v2880_v0 }
 0x1c1   :  { %v2459_v9 = vpop.eup %2458  ;;  %2464 = vtanh.f32 %v767_v5 }
 0x1c2   :  { %2115 = vmatprep.mubr.f32.mxu1 %v2459_v9 }
 0x1c3   :  { %v2461_v10 = vpop.eup %2460  ;;  %v770_v14 = vpop.f32.mrb[68].mxu0 }
 0x1c4   :  { %v772_v12 = vpop.f32.mrb[69].mxu0  ;;  %2116 = vmatmul.mubr.f32.gmra.mrb[30].mxu1 %v2461_v10  ;;  %v2890_v16 = vadd.f32 %v770_v14, %v2740_v46 }
 0x1c5   :  { %v773_v13 = vadd.f32 %v772_v12, %v2738_v45  ;;  %v774_v15 = vpop.f32.mrb[70].mxu0 }
 0x1c6   :  { %v2893_v7 = vadd.f32 %v774_v15, %v2740_v46  ;;  %v776_v8 = vpop.f32.mrb[71].mxu0 }
 0x1c7   :  { %2466 = vtanh.f32 %v773_v13  ;;  %v777_v11 = vadd.f32 %v776_v8, %v2738_v45 }
 0x1c8   :  { %v2245_v17 = vpack.c.bf16 %v2893_v7, %v2890_v16 }
 0x1c9   :  { %v2463_v20 = vpop.eup %2462  ;;  %2468 = vtanh.f32 %v777_v11 }
 0x1ca   :  { %2118 = vmatprep.mubr.f32.mxu1 %v2463_v20 }
 0x1cb   :  { %v2465_v21 = vpop.eup %2464  ;;  %v780_v23 = vpop.f32.mrb[72].mxu0 }
 0x1cc   :  { %v782_v24 = vpop.f32.mrb[73].mxu0  ;;  %2119 = vmatmul.mubr.f32.gmra.mrb[32].mxu1 %v2465_v21  ;;  %v2900_v27 = vadd.f32 %v780_v23, %v2740_v46 }
 0x1cd   :  { %v783_v25 = vadd.f32 %v782_v24, %v2738_v45  ;;  %v784_v26 = vpop.f32.mrb[74].mxu0 }
 0x1ce   :  { %v2903_v18 = vadd.f32 %v784_v26, %v2740_v46  ;;  %v786_v19 = vpop.f32.mrb[75].mxu0 }
 0x1cf   :  { %2470 = vtanh.f32 %v783_v25  ;;  %v787_v22 = vadd.f32 %v786_v19, %v2738_v45 }
 0x1d0   :  { %v2248_v28 = vpack.c.bf16 %v2903_v18, %v2900_v27 }
 0x1d1   :  { %v2467_v31 = vpop.eup %2466  ;;  %2472 = vtanh.f32 %v787_v22 }
 0x1d2   :  { %2121 = vmatprep.mubr.f32.mxu1 %v2467_v31 }
 0x1d3   :  { %v2469_v32 = vpop.eup %2468  ;;  %v790_v34 = vpop.f32.mrb[76].mxu0 }
 0x1d4   :  { %v792_v35 = vpop.f32.mrb[77].mxu0  ;;  %2122 = vmatmul.mubr.f32.gmra.mrb[34].mxu1 %v2469_v32  ;;  %v2910_v38 = vadd.f32 %v790_v34, %v2740_v46 }
 0x1d5   :  { %v793_v36 = vadd.f32 %v792_v35, %v2738_v45  ;;  %v794_v37 = vpop.f32.mrb[78].mxu0 }
 0x1d6   :  { %v2913_v29 = vadd.f32 %v794_v37, %v2740_v46  ;;  %v796_v30 = vpop.f32.mrb[79].mxu0 }
 0x1d7   :  { %2474 = vtanh.f32 %v793_v36  ;;  %v797_v33 = vadd.f32 %v796_v30, %v2738_v45 }
 0x1d8   :  { %v2251_v39 = vpack.c.bf16 %v2913_v29, %v2910_v38 }
 0x1d9   :  { %v2471_v43 = vpop.eup %2470  ;;  %2476 = vtanh.f32 %v797_v33 }
 0x1da   :  { %2124 = vmatprep.mubr.f32.mxu1 %v2471_v43 }
 0x1db   :  { %v2473_v44 = vpop.eup %2472  ;;  %v800_v48 = vpop.f32.mrb[80].mxu0 }
 0x1dc   :  { %v802_v49 = vpop.f32.mrb[81].mxu0  ;;  %2125 = vmatmul.mubr.f32.gmra.mrb[36].mxu1 %v2473_v44  ;;  %v2920_v55 = vadd.f32 %v800_v48, %v2740_v46  ;;  %v1219_v44 = vadd.s32 8, %v2731_v41 }
 0x1dd   :  { %v803_v51 = vadd.f32 %v802_v49, %v2738_v45  ;;  %v804_v52 = vpop.f32.mrb[82].mxu0 }
 0x1de   :  { %v2923_v40 = vadd.f32 %v804_v52, %v2740_v46  ;;  %v806_v42 = vpop.f32.mrb[83].mxu0  ;;  %v1220_v52 = vadd.s32 16, %v2731_v41 }
 0x1df   :  { %2478 = vtanh.f32 %v803_v51  ;;  %v807_v47 = vadd.f32 %v806_v42, %v2738_v45 }
 0x1e0   :  { %v2254_v50 = vpack.c.bf16 %v2923_v40, %v2920_v55 }
 0x1e1   :  { %v2475_v53 = vpop.eup %2474  ;;  %2480 = vtanh.f32 %v807_v47 }
 0x1e2   :  { %2127 = vmatprep.mubr.f32.mxu1 %v2475_v53 }
 0x1e3   :  { %v2477_v54 = vpop.eup %2476  ;;  %v810_v56 = vpop.f32.mrb[84].mxu0 }
 0x1e4   :  { %v812_v59 = vpop.f32.mrb[85].mxu0  ;;  %2128 = vmatmul.mubr.f32.gmra.mrb[38].mxu1 %v2477_v54  ;;  %v2930_v2 = vadd.f32 %v810_v56, %v2740_v46  ;;  %v1221_v54 = vadd.s32 24, %v2731_v41 }
 0x1e5   :  { %v813_v62 = vadd.f32 %v812_v59, %v2738_v45  ;;  %v814_v1 = vpop.f32.mrb[86].mxu0 }
 0x1e6   :  { %v2933_v57 = vadd.f32 %v814_v1, %v2740_v46  ;;  %v816_v58 = vpop.f32.mrb[87].mxu0  ;;  %v1222_v1 = vadd.s32 32, %v2731_v41 }
 0x1e7   :  { %2482 = vtanh.f32 %v813_v62  ;;  %v817_v63 = vadd.f32 %v816_v58, %v2738_v45 }
 0x1e8   :  { %v2257_v60 = vpack.c.bf16 %v2933_v57, %v2930_v2 }
 0x1e9   :  { %v2479_v61 = vpop.eup %2478  ;;  %2484 = vtanh.f32 %v817_v63 }
 0x1ea   :  { %2130 = vmatprep.mubr.f32.mxu1 %v2479_v61 }
 0x1eb   :  { %v2481_v4 = vpop.eup %2480  ;;  %v820_v5 = vpop.f32.mrb[88].mxu0 }
 0x1ec   :  { %v822_v9 = vpop.f32.mrb[89].mxu0  ;;  %2131 = vmatmul.mubr.f32.gmra.mrb[40].mxu1 %v2481_v4  ;;  %v2940_v12 = vadd.f32 %v820_v5, %v2740_v46  ;;  %v1223_v4 = vadd.s32 40, %v2731_v41 }
 0x1ed   :  { %v823_v10 = vadd.f32 %v822_v9, %v2738_v45  ;;  %v824_v14 = vpop.f32.mrb[90].mxu0 }
 0x1ee   :  { %v2943_v13 = vadd.f32 %v824_v14, %v2740_v46  ;;  %v826_v15 = vpop.f32.mrb[91].mxu0  ;;  %v1224_v14 = vadd.s32 48, %v2731_v41 }
 0x1ef   :  { %2486 = vtanh.f32 %v823_v10  ;;  %v827_v8 = vadd.f32 %v826_v15, %v2738_v45 }
 0x1f0   :  { %v2260_v11 = vpack.c.bf16 %v2943_v13, %v2940_v12 }
 0x1f1   :  { %v2483_v20 = vpop.eup %2482  ;;  %2488 = vtanh.f32 %v827_v8 }
 0x1f2   :  { %2133 = vmatprep.mubr.f32.mxu1 %v2483_v20 }
 0x1f3   :  { %v2485_v21 = vpop.eup %2484  ;;  %v830_v23 = vpop.f32.mrb[92].mxu0 }
 0x1f4   :  { %v832_v24 = vpop.f32.mrb[93].mxu0  ;;  %2134 = vmatmul.mubr.f32.gmra.mrb[42].mxu1 %v2485_v21  ;;  %v2950_v19 = vadd.f32 %v830_v23, %v2740_v46  ;;  %v1225_v21 = vadd.s32 56, %v2731_v41 }
 0x1f5   :  { %v833_v25 = vadd.f32 %v832_v24, %v2738_v45  ;;  %v834_v26 = vpop.f32.mrb[94].mxu0 }
 0x1f6   :  { %v2953_v22 = vadd.f32 %v834_v26, %v2740_v46  ;;  %v836_v31 = vpop.f32.mrb[95].mxu0  ;;  %v2961_v46 = vstv %s3188_s0  ;;  %v1226_v26 = vadd.s32 64, %v2731_v41 }
 0x1f7   :  { %2490 = vtanh.f32 %v833_v25  ;;  %v837_v32 = vadd.f32 %v836_v31, %v2738_v45  ;;  %v2966_v45 = vld [vmem:[%s3193_s5] ss:$0 sm:$0xff]  ;;  %vm1316_vm0 = vcmp.lt.s32.totalorder %v2731_v41, %v2961_v46  ;;  %vm1317_vm1 = vcmp.lt.s32.totalorder %v1219_v44, %v2961_v46 }
 0x1f8   :  { %v2263_v34 = vpack.c.bf16 %v2953_v22, %v2950_v19  ;;  %vm1318_vm2 = vcmp.lt.s32.totalorder %v1220_v52, %v2961_v46  ;;  %vm1319_vm3 = vcmp.lt.s32.totalorder %v1221_v54, %v2961_v46  ;;  %vm1320_vm4 = vcmp.lt.s32.totalorder %v1222_v1, %v2961_v46 }
 0x1f9   :  { %v2487_v35 = vpop.eup %2486  ;;  %2492 = vtanh.f32 %v837_v32  ;;  %vm1321_vm5 = vcmp.lt.s32.totalorder %v1223_v4, %v2961_v46  ;;  %vm1322_vm6 = vcmp.lt.s32.totalorder %v1224_v14, %v2961_v46  ;;  %vm1323_vm7 = vcmp.lt.s32.totalorder %v1225_v21, %v2961_v46 }
 0x1fa   :  { %2136 = vmatprep.mubr.f32.mxu1 %v2487_v35  ;;  %vm1324_vm8 = vcmp.lt.s32.totalorder %v1226_v26, %v2961_v46 }
 0x1fb   :  { %v2489_v36 = vpop.eup %2488 }
 0x1fc   :  { %2137 = vmatmul.mubr.f32.gmra.mrb[44].mxu1 %v2489_v36  ;;  %v1227_v36 = vadd.s32 72, %v2731_v41 }
 0x1fe   :  { %vm1325_vm9 = vcmp.lt.s32.totalorder %v1227_v36, %v2961_v46 }
 0x201   :  { %v2491_v37 = vpop.eup %2490 }
 0x202   :  { %2139 = vmatprep.mubr.f32.mxu1 %v2491_v37 }
 0x203   :  { %v2493_v30 = vpop.eup %2492 }
 0x204   :  { %2140 = vmatmul.mubr.f32.gmra.mrb[46].mxu1 %v2493_v30 }
 0x21f   :  { %v2072_v33 = vpop.f32.mrb[0].mxu1 }
 0x220   :  { %v976_v43 = vpop.f32.mrb[1].mxu1  ;;  %v982_v49 = vadd.f32 %v2072_v33, %v2966_v45 }
 0x221   :  { %v977_v48 = vadd.f32 %v2966_v45, %v976_v43  ;;  %v1228_v43 = vadd.s32 80, %v2731_v41 }
 0x222   :  { %v1461_v47 = vsel %vm1317_vm1, %v982_v49, -1e+30 }
 0x223   :  { %v1460_v51 = vsel %vm1316_vm0, %v977_v48, -1e+30  ;;  %vm1326_vm10 = vcmp.lt.s32.totalorder %v1228_v43, %v2961_v46 }
 0x224   :  { %1508 = vxpose.xlu0.b32.start [1/16] (narrow) %v1460_v51, 8  ;;  %v1229_v51 = vadd.s32 88, %v2731_v41 }
 0x226   :  { %vm1327_vm11 = vcmp.lt.s32.totalorder %v1229_v51, %v2961_v46 }
 0x227   :  { %v2075_v42 = vpop.f32.mrb[2].mxu1 }
 0x228   :  { %v986_v53 = vpop.f32.mrb[3].mxu1  ;;  %1509 = vxpose.xlu0.b32.cont [2/16] (narrow) %v1461_v47, 8  ;;  %v992_v59 = vadd.f32 %v2075_v42, %v2966_v45 }
 0x229   :  { %v987_v56 = vadd.f32 %v2966_v45, %v986_v53  ;;  %v1230_v53 = vadd.s32 96, %v2731_v41 }
 0x22a   :  { %v1463_v63 = vsel %vm1319_vm3, %v992_v59, -1e+30 }
 0x22b   :  { %v1462_v62 = vsel %vm1318_vm2, %v987_v56, -1e+30  ;;  %vm1328_vm12 = vcmp.lt.s32.totalorder %v1230_v53, %v2961_v46 }
 0x22c   :  { %1510 = vxpose.xlu0.b32.cont [3/16] (narrow) %v1462_v62, 8  ;;  %v1231_v62 = vadd.s32 104, %v2731_v41 }
 0x22e   :  { %vm1329_vm13 = vcmp.lt.s32.totalorder %v1231_v62, %v2961_v46 }
 0x22f   :  { %v2078_v58 = vpop.f32.mrb[4].mxu1 }
 0x230   :  { %v996_v61 = vpop.f32.mrb[5].mxu1  ;;  %1511 = vxpose.xlu0.b32.cont [4/16] (narrow) %v1463_v63, 8  ;;  %v1002_v9 = vadd.f32 %v2078_v58, %v2966_v45 }
 0x231   :  { %v997_v5 = vadd.f32 %v2966_v45, %v996_v61  ;;  %v1232_v61 = vadd.s32 112, %v2731_v41 }
 0x232   :  { %v1465_v8 = vsel %vm1321_vm5, %v1002_v9, -1e+30 }
 0x233   :  { %v1464_v10 = vsel %vm1320_vm4, %v997_v5, -1e+30  ;;  %vm1330_vm14 = vcmp.lt.s32.totalorder %v1232_v61, %v2961_v46 }
 0x234   :  { %1512 = vxpose.xlu0.b32.cont [5/16] (narrow) %v1464_v10, 8  ;;  %v1233_v10 = vadd.s32 120, %v2731_v41 }
 0x236   :  { %vm1331_vm15 = vcmp.lt.s32.totalorder %v1233_v10, %v2961_v46 }
 0x237   :  { %v2081_v15 = vpop.f32.mrb[6].mxu1 }
 0x238   :  { %v1006_v20 = vpop.f32.mrb[7].mxu1  ;;  %1513 = vxpose.xlu0.b32.cont [6/16] (narrow) %v1465_v8, 8  ;;  %v1012_v24 = vadd.f32 %v2081_v15, %v2966_v45 }
 0x239   :  { %v1007_v23 = vadd.f32 %v2966_v45, %v1006_v20  ;;  %v1234_v20 = vadd.s32 128, %v2731_v41 }
 0x23a   :  { %v1467_v32 = vsel %vm1323_vm7, %v1012_v24, -1e+30 }
 0x23b   :  { %v1466_v25 = vsel %vm1322_vm6, %v1007_v23, -1e+30  ;;  %vm1332_vm0 = vcmp.lt.s32.totalorder %v1234_v20, %v2961_v46 }
 0x23c   :  { %1514 = vxpose.xlu0.b32.cont [7/16] (narrow) %v1466_v25, 8  ;;  %v1235_v25 = vadd.s32 136, %v2731_v41 }
 0x23e   :  { %vm1333_vm1 = vcmp.lt.s32.totalorder %v1235_v25, %v2961_v46 }
 0x23f   :  { %v2084_v31 = vpop.f32.mrb[8].mxu1 }
 0x240   :  { %v1016_v35 = vpop.f32.mrb[9].mxu1  ;;  %1515 = vxpose.xlu0.b32.cont [8/16] (narrow) %v1467_v32, 8  ;;  %v1022_v30 = vadd.f32 %v2084_v31, %v2966_v45 }
 0x241   :  { %v1017_v37 = vadd.f32 %v2966_v45, %v1016_v35  ;;  %v1236_v35 = vadd.s32 144, %v2731_v41 }
 0x242   :  { %v1469_v48 = vsel %vm1325_vm9, %v1022_v30, -1e+30 }
 0x243   :  { %v1468_v33 = vsel %vm1324_vm8, %v1017_v37, -1e+30  ;;  %vm1334_vm2 = vcmp.lt.s32.totalorder %v1236_v35, %v2961_v46 }
 0x244   :  { %1516 = vxpose.xlu0.b32.cont [9/16] (narrow) %v1468_v33, 8  ;;  %v1237_v33 = vadd.s32 152, %v2731_v41 }
 0x246   :  { %vm1335_vm3 = vcmp.lt.s32.totalorder %v1237_v33, %v2961_v46 }
 0x247   :  { %v2087_v44 = vpop.f32.mrb[10].mxu1 }
 0x248   :  { %v1026_v49 = vpop.f32.mrb[11].mxu1  ;;  %1517 = vxpose.xlu0.b32.cont [10/16] (narrow) %v1469_v48, 8  ;;  %v1032_v42 = vadd.f32 %v2087_v44, %v2966_v45 }
 0x249   :  { %v1027_v52 = vadd.f32 %v2966_v45, %v1026_v49  ;;  %v1238_v49 = vadd.s32 160, %v2731_v41 }
 0x24a   :  { %v1471_v56 = vsel %vm1327_vm11, %v1032_v42, -1e+30 }
 0x24b   :  { %v1470_v47 = vsel %vm1326_vm10, %v1027_v52, -1e+30  ;;  %vm1336_vm4 = vcmp.lt.s32.totalorder %v1238_v49, %v2961_v46 }
 0x24c   :  { %1518 = vxpose.xlu0.b32.cont [11/16] (narrow) %v1470_v47, 8  ;;  %v1239_v47 = vadd.s32 168, %v2731_v41 }
 0x24e   :  { %vm1337_vm5 = vcmp.lt.s32.totalorder %v1239_v47, %v2961_v46 }
 0x24f   :  { %v2090_v54 = vpop.f32.mrb[12].mxu1 }
 0x250   :  { %v1036_v59 = vpop.f32.mrb[13].mxu1  ;;  %1519 = vxpose.xlu0.b32.cont [12/16] (narrow) %v1471_v56, 8  ;;  %v1042_v58 = vadd.f32 %v2090_v54, %v2966_v45 }
 0x251   :  { %v1037_v1 = vadd.f32 %v2966_v45, %v1036_v59  ;;  %v1240_v59 = vadd.s32 176, %v2731_v41 }
 0x252   :  { %v1473_v5 = vsel %vm1329_vm13, %v1042_v58, -1e+30 }
 0x253   :  { %v1472_v63 = vsel %vm1328_vm12, %v1037_v1, -1e+30  ;;  %vm1338_vm6 = vcmp.lt.s32.totalorder %v1240_v59, %v2961_v46 }
 0x254   :  { %1520 = vxpose.xlu0.b32.cont [13/16] (narrow) %v1472_v63, 8  ;;  %v1241_v63 = vadd.s32 184, %v2731_v41 }
 0x256   :  { %vm1339_vm7 = vcmp.lt.s32.totalorder %v1241_v63, %v2961_v46 }
 0x257   :  { %v2093_v4 = vpop.f32.mrb[14].mxu1 }
 0x258   :  { %v1046_v9 = vpop.f32.mrb[15].mxu1  ;;  %1521 = vxpose.xlu0.b32.cont [14/16] (narrow) %v1473_v5, 8  ;;  %v1052_v15 = vadd.f32 %v2093_v4, %v2966_v45 }
 0x259   :  { %v1047_v14 = vadd.f32 %v2966_v45, %v1046_v9  ;;  %v1242_v9 = vadd.s32 192, %v2731_v41 }
 0x25a   :  { %v1475_v23 = vsel %vm1331_vm15, %v1052_v15, -1e+30 }
 0x25b   :  { %v1474_v8 = vsel %vm1330_vm14, %v1047_v14, -1e+30  ;;  %vm1340_vm8 = vcmp.lt.s32.totalorder %v1242_v9, %v2961_v46 }
 0x25c   :  { %1522 = vxpose.xlu0.b32.cont [15/16] (narrow) %v1474_v8, 8  ;;  %v1243_v8 = vadd.s32 200, %v2731_v41 }
 0x25e   :  { %vm1341_vm9 = vcmp.lt.s32.totalorder %v1243_v8, %v2961_v46 }
 0x25f   :  { %v2096_v21 = vpop.f32.mrb[16].mxu1 }
 0x260   :  { %v1056_v24 = vpop.f32.mrb[17].mxu1  ;;  %1523 = vxpose.xlu0.b32.end [16/16] (narrow) %v1475_v23, 8  ;;  %v1062_v31 = vadd.f32 %v2096_v21, %v2966_v45 }
 0x261   :  { %v1057_v26 = vadd.f32 %v2966_v45, %v1056_v24  ;;  %v1244_v24 = vadd.s32 208, %v2731_v41 }
 0x262   :  { %v1477_v37 = vsel %vm1333_vm1, %v1062_v31, -1e+30 }
 0x263   :  { %v1476_v32 = vsel %vm1332_vm0, %v1057_v26, -1e+30  ;;  %vm1342_vm10 = vcmp.lt.s32.totalorder %v1244_v24, %v2961_v46 }
 0x264   :  { %1540 = vxpose.xlu1.b32.start [1/16] (narrow) %v1476_v32, 8  ;;  %v1245_v32 = vadd.s32 216, %v2731_v41 }
 0x266   :  { %vm1343_vm11 = vcmp.lt.s32.totalorder %v1245_v32, %v2961_v46  ;;  %v1254_v32 = vadd.s32 288, %v2731_v41 }
 0x267   :  { %v2099_v36 = vpop.f32.mrb[18].mxu1 }
 0x268   :  { %v1066_v30 = vpop.f32.mrb[19].mxu1  ;;  %1541 = vxpose.xlu1.b32.cont [2/16] (narrow) %v1477_v37, 8  ;;  %v1072_v44 = vadd.f32 %v2099_v36, %v2966_v45 }
 0x269   :  { %v1067_v43 = vadd.f32 %v2966_v45, %v1066_v30  ;;  %v1246_v30 = vadd.s32 224, %v2731_v41 }
 0x26a   :  { %v1479_v52 = vsel %vm1335_vm3, %v1072_v44, -1e+30  ;;  %vm70_vm3 = vcmask 3072  }
 0x26b   :  { %v1478_v48 = vsel %vm1334_vm2, %v1067_v43, -1e+30  ;;  %vm1344_vm12 = vcmp.lt.s32.totalorder %v1246_v30, %v2961_v46  ;;  %v1255_v30 = vadd.s32 296, %v2731_v41 }
 0x26c   :  { %1542 = vxpose.xlu1.b32.cont [3/16] (narrow) %v1478_v48, 8  ;;  %v1247_v48 = vadd.s32 232, %v2731_v41 }
 0x26e   :  { %vm1345_vm13 = vcmp.lt.s32.totalorder %v1247_v48, %v2961_v46  ;;  %v1256_v48 = vadd.s32 304, %v2731_v41 }
 0x26f   :  { %v2102_v51 = vpop.f32.mrb[20].mxu1 }
 0x270   :  { %v1076_v42 = vpop.f32.mrb[21].mxu1  ;;  %1543 = vxpose.xlu1.b32.cont [4/16] (narrow) %v1479_v52, 8  ;;  %v1082_v54 = vadd.f32 %v2102_v51, %v2966_v45 }
 0x271   :  { %v1077_v53 = vadd.f32 %v2966_v45, %v1076_v42  ;;  %v1248_v42 = vadd.s32 240, %v2731_v41 }
 0x272   :  { %v1481_v1 = vsel %vm1337_vm5, %v1082_v54, -1e+30  ;;  %vm1352_vm5 = vcmp.lt.s32.totalorder %v1254_v32, %v2961_v46 }
 0x273   :  { %v1480_v56 = vsel %vm1336_vm4, %v1077_v53, -1e+30  ;;  %vm1346_vm14 = vcmp.lt.s32.totalorder %v1248_v42, %v2961_v46  ;;  %v1257_v42 = vadd.s32 312, %v2731_v41 }
 0x274   :  { %1544 = vxpose.xlu1.b32.cont [5/16] (narrow) %v1480_v56, 8  ;;  %v1249_v56 = vadd.s32 248, %v2731_v41 }
 0x276   :  { %vm1347_vm15 = vcmp.lt.s32.totalorder %v1249_v56, %v2961_v46  ;;  %v1258_v56 = vadd.s32 320, %v2731_v41 }
 0x277   :  { %v2105_v62 = vpop.f32.mrb[22].mxu1 }
 0x278   :  { %v1086_v58 = vpop.f32.mrb[23].mxu1  ;;  %1545 = vxpose.xlu1.b32.cont [6/16] (narrow) %v1481_v1, 8  ;;  %v1092_v4 = vadd.f32 %v2105_v62, %v2966_v45 }
 0x279   :  { %v1087_v61 = vadd.f32 %v2966_v45, %v1086_v58  ;;  %v1250_v58 = vadd.s32 256, %v2731_v41 }
 0x27a   :  { %v1483_v14 = vsel %vm1339_vm7, %v1092_v4, -1e+30  ;;  %vm1354_vm7 = vcmp.lt.s32.totalorder %v1256_v48, %v2961_v46 }
 0x27b   :  { %v1482_v5 = vsel %vm1338_vm6, %v1087_v61, -1e+30  ;;  %vm1348_vm0 = vcmp.lt.s32.totalorder %v1250_v58, %v2961_v46  ;;  %vm1353_vm6 = vcmp.lt.s32.totalorder %v1255_v30, %v2961_v46  ;;  %v1259_v58 = vadd.s32 328, %v2731_v41 }
 0x27c   :  { %1546 = vxpose.xlu1.b32.cont [7/16] (narrow) %v1482_v5, 8  ;;  %v1251_v5 = vadd.s32 264, %v2731_v41 }
 0x27e   :  { %vm1349_vm1 = vcmp.lt.s32.totalorder %v1251_v5, %v2961_v46  ;;  %v1260_v5 = vadd.s32 336, %v2731_v41 }
 0x27f   :  { %v2108_v10 = vpop.f32.mrb[24].mxu1 }
 0x280   :  { %v1096_v15 = vpop.f32.mrb[25].mxu1  ;;  %1547 = vxpose.xlu1.b32.cont [8/16] (narrow) %v1483_v14, 8  ;;  %v1102_v21 = vadd.f32 %v2108_v10, %v2966_v45 }
 0x281   :  { %v1097_v20 = vadd.f32 %v2966_v45, %v1096_v15  ;;  %v1252_v15 = vadd.s32 272, %v2731_v41 }
 0x282   :  { %v1485_v26 = vsel %vm1341_vm9, %v1102_v21, -1e+30  ;;  %vm1356_vm9 = vcmp.lt.s32.totalorder %v1258_v56, %v2961_v46 }
 0x283   :  { %v1484_v23 = vsel %vm1340_vm8, %v1097_v20, -1e+30  ;;  %vm1350_vm2 = vcmp.lt.s32.totalorder %v1252_v15, %v2961_v46  ;;  %vm1355_vm8 = vcmp.lt.s32.totalorder %v1257_v42, %v2961_v46  ;;  %v1261_v15 = vadd.s32 344, %v2731_v41 }
 0x284   :  { %1548 = vxpose.xlu1.b32.cont [9/16] (narrow) %v1484_v23, 8  ;;  %v1253_v23 = vadd.s32 280, %v2731_v41 }
 0x286   :  { %vm1351_vm4 = vcmp.lt.s32.totalorder %v1253_v23, %v2961_v46  ;;  %v1262_v23 = vadd.s32 352, %v2731_v41 }
 0x287   :  { %v2111_v25 = vpop.f32.mrb[26].mxu1 }
 0x288   :  { %v1106_v31 = vpop.f32.mrb[27].mxu1  ;;  %1549 = vxpose.xlu1.b32.cont [10/16] (narrow) %v1485_v26, 8  ;;  %v1112_v36 = vadd.f32 %v2111_v25, %v2966_v45  ;;  %v2602_v25 = vmov -inf  }
 0x289   :  { %v1107_v35 = vadd.f32 %v2966_v45, %v1106_v31  ;;  %71 = vst.msk [vmem:[%s3195_s7] sm:$0xf] %vm70_vm3, %v2602_v25 }
 0x28a   :  { %v1487_v43 = vsel %vm1343_vm11, %v1112_v36, -1e+30  ;;  %vm1358_vm11 = vcmp.lt.s32.totalorder %v1260_v5, %v2961_v46 }
 0x28b   :  { %v1486_v37 = vsel %vm1342_vm10, %v1107_v35, -1e+30  ;;  %vm1357_vm10 = vcmp.lt.s32.totalorder %v1259_v58, %v2961_v46 }
 0x28c   :  { %1550 = vxpose.xlu1.b32.cont [11/16] (narrow) %v1486_v37, 8 }
 0x28f   :  { %v2114_v33 = vpop.f32.mrb[28].mxu1 }
 0x290   :  { %v1116_v44 = vpop.f32.mrb[29].mxu1  ;;  %1551 = vxpose.xlu1.b32.cont [12/16] (narrow) %v1487_v43, 8  ;;  %v1122_v51 = vadd.f32 %v2114_v33, %v2966_v45  ;;  %v1618_v58 = vld [vmem:[%s3195_s7] sm:$0xf] }
 0x291   :  { %v1117_v49 = vadd.f32 %v2966_v45, %v1116_v44 }
 0x292   :  { %v1489_v53 = vsel %vm1345_vm13, %v1122_v51, -1e+30  ;;  %vm1360_vm13 = vcmp.lt.s32.totalorder %v1262_v23, %v2961_v46 }
 0x293   :  { %v1488_v52 = vsel %vm1344_vm12, %v1117_v49, -1e+30  ;;  %vm1359_vm12 = vcmp.lt.s32.totalorder %v1261_v15, %v2961_v46 }
 0x294   :  { %1552 = vxpose.xlu1.b32.cont [13/16] (narrow) %v1488_v52, 8 }
 0x297   :  { %v2117_v47 = vpop.f32.mrb[30].mxu1 }
 0x298   :  { %v1126_v54 = vpop.f32.mrb[31].mxu1  ;;  %1553 = vxpose.xlu1.b32.cont [14/16] (narrow) %v1489_v53, 8  ;;  %v1132_v62 = vadd.f32 %v2117_v47, %v2966_v45 }
 0x299   :  { %v1127_v59 = vadd.f32 %v2966_v45, %v1126_v54 }
 0x29a   :  { %v1491_v61 = vsel %vm1347_vm15, %v1132_v62, -1e+30 }
 0x29b   :  { %v1490_v1 = vsel %vm1346_vm14, %v1127_v59, -1e+30 }
 0x29c   :  { %1554 = vxpose.xlu1.b32.cont [15/16] (narrow) %v1490_v1, 8 }
 0x29f   :  { %v2120_v63 = vpop.f32.mrb[32].mxu1 }
 0x2a0   :  { %v1136_v4 = vpop.f32.mrb[33].mxu1  ;;  %1555 = vxpose.xlu1.b32.end [16/16] (narrow) %v1491_v61, 8  ;;  %v1142_v10 = vadd.f32 %v2120_v63, %v2966_v45 }
 0x2a1   :  { %v1137_v9 = vadd.f32 %v2966_v45, %v1136_v4 }
 0x2a2   :  { %v1493_v20 = vsel %vm1349_vm1, %v1142_v10, -1e+30  ;;  %vm1610_vm1 = vcmask 1043456  }
 0x2a3   :  { %v1492_v14 = vsel %vm1348_vm0, %v1137_v9, -1e+30 }
 0x2a4   :  { %1572 = vxpose.xlu0.b32.start [1/16] (narrow) %v1492_v14, 8  ;;  %v1524_v42 = vpop.trf.xlu0 }
 0x2a5   :  { %v1611_v56 = vsel %vm1610_vm1, %v1524_v42, -inf }
 0x2a7   :  { %v2123_v8 = vpop.f32.mrb[34].mxu1 }
 0x2a8   :  { %v1146_v21 = vpop.f32.mrb[35].mxu1  ;;  %1573 = vxpose.xlu0.b32.cont [2/16] (narrow) %v1493_v20, 8  ;;  %v1152_v26 = vadd.f32 %v2123_v8, %v2966_v45 }
 0x2a9   :  { %v1147_v24 = vadd.f32 %v2966_v45, %v1146_v21 }
 0x2aa   :  { %v1495_v36 = vsel %vm1351_vm4, %v1152_v26, -1e+30 }
 0x2ab   :  { %v1494_v31 = vsel %vm1350_vm2, %v1147_v24, -1e+30  ;;  %vm2606_vm2 = vmmov 0  }
 0x2ac   :  { %1574 = vxpose.xlu0.b32.cont [3/16] (narrow) %v1494_v31, 8  ;;  %v1263_v31 = vadd.s32 360, %v2731_v41 }
 0x2ae   :  { %vm1361_vm14 = vcmp.lt.s32.totalorder %v1263_v31, %v2961_v46 }
 0x2af   :  { %v2126_v35 = vpop.f32.mrb[36].mxu1 }
 0x2b0   :  { %v1156_v37 = vpop.f32.mrb[37].mxu1  ;;  %1575 = vxpose.xlu0.b32.cont [4/16] (narrow) %v1495_v36, 8  ;;  %v1162_v43 = vadd.f32 %v2126_v35, %v2966_v45 }
 0x2b1   :  { %v1157_v33 = vadd.f32 %v2966_v45, %v1156_v37  ;;  %v1264_v37 = vadd.s32 368, %v2731_v41 }
 0x2b2   :  { %v1497_v51 = vsel %vm1353_vm6, %v1162_v43, -1e+30 }
 0x2b3   :  { %v1496_v44 = vsel %vm1352_vm5, %v1157_v33, -1e+30  ;;  %vm1362_vm15 = vcmp.lt.s32.totalorder %v1264_v37, %v2961_v46 }
 0x2b4   :  { %1576 = vxpose.xlu0.b32.cont [5/16] (narrow) %v1496_v44, 8  ;;  %v1265_v44 = vadd.s32 376, %v2731_v41 }
 0x2b6   :  { %vm1363_vm0 = vcmp.lt.s32.totalorder %v1265_v44, %v2961_v46  ;;  %v2604_v46 = vmov 0.0  }
 0x2b7   :  { %v2129_v49 = vpop.f32.mrb[38].mxu1  ;;  %73 = vst [vmem:[#allocation10] sm:$0xf] %v2604_v46  ;;  %72 = vst.msk [vmem:[%s3196_s8] sm:$0xf] %vm70_vm3, %v2604_v46 }
 0x2b8   :  { %v1166_v52 = vpop.f32.mrb[39].mxu1  ;;  %1577 = vxpose.xlu0.b32.cont [6/16] (narrow) %v1497_v51, 8  ;;  %v1172_v53 = vadd.f32 %v2129_v49, %v2966_v45 }
 0x2b9   :  { %v1167_v47 = vadd.f32 %v2966_v45, %v1166_v52 }
 0x2ba   :  { %v1499_v62 = vsel %vm1355_vm8, %v1172_v53, -1e+30 }
 0x2bb   :  { %v1498_v54 = vsel %vm1354_vm7, %v1167_v47, -1e+30 }
 0x2bc   :  { %1578 = vxpose.xlu0.b32.cont [7/16] (narrow) %v1498_v54, 8 }
 0x2bf   :  { %v2132_v59 = vpop.f32.mrb[40].mxu1 }
 0x2c0   :  { %v1176_v1 = vpop.f32.mrb[41].mxu1  ;;  %1579 = vxpose.xlu0.b32.cont [8/16] (narrow) %v1499_v62, 8  ;;  %v1182_v61 = vadd.f32 %v2132_v59, %v2966_v45 }
 0x2c1   :  { %v1177_v63 = vadd.f32 %v2966_v45, %v1176_v1  ;;  %v2603_v1 = vmov 0  }
 0x2c2   :  { %v1501_v10 = vsel %vm1357_vm10, %v1182_v61, -1e+30  ;;  %2276 = vset.pattern.permute.xlu1 %v2603_v1 }
 0x2c3   :  { %v1500_v4 = vsel %vm1356_vm9, %v1177_v63, -1e+30 }
 0x2c4   :  { %1580 = vxpose.xlu0.b32.cont [9/16] (narrow) %v1500_v4, 8 }
 0x2c7   :  { %v2135_v9 = vpop.f32.mrb[42].mxu1 }
 0x2c8   :  { %v1186_v14 = vpop.f32.mrb[43].mxu1  ;;  %1581 = vxpose.xlu0.b32.cont [10/16] (narrow) %v1501_v10, 8  ;;  %v1192_v20 = vadd.f32 %v2135_v9, %v2966_v45  ;;  %v2605_v10 = vmov 0.0|0.0  }
 0x2c9   :  { %v1187_v8 = vadd.f32 %v2966_v45, %v1186_v14  ;;  %2241 = vmatprep.subr.bf16.mxu1 %v2605_v10 }
 0x2ca   :  { %v1503_v25 = vsel %vm1359_vm12, %v1192_v20, -1e+30 }
 0x2cb   :  { %v1502_v21 = vsel %vm1358_vm11, %v1187_v8, -1e+30 }
 0x2cc   :  { %1582 = vxpose.xlu0.b32.cont [11/16] (narrow) %v1502_v21, 8 }
 0x2cf   :  { %v2138_v24 = vpop.f32.mrb[44].mxu1 }
 0x2d0   :  { %v1196_v26 = vpop.f32.mrb[45].mxu1  ;;  %1583 = vxpose.xlu0.b32.cont [12/16] (narrow) %v1503_v25, 8  ;;  %v1202_v35 = vadd.f32 %v2138_v24, %v2966_v45 }
 0x2d1   :  { %v1197_v32 = vadd.f32 %v2966_v45, %v1196_v26 }
 0x2d2   :  { %v1505_v33 = vsel %vm1361_vm14, %v1202_v35, -1e+30 }
 0x2d3   :  { %v1504_v36 = vsel %vm1360_vm13, %v1197_v32, -1e+30 }
 0x2d4   :  { %1584 = vxpose.xlu0.b32.cont [13/16] (narrow) %v1504_v36, 8 }
 0x2d7   :  { %v2141_v30 = vpop.f32.mrb[46].mxu1 }
 0x2d8   :  { %v1206_v43 = vpop.f32.mrb[47].mxu1  ;;  %1585 = vxpose.xlu0.b32.cont [14/16] (narrow) %v1505_v33, 8  ;;  %v1212_v49 = vadd.f32 %v2141_v30, %v2966_v45 }
 0x2d9   :  { %v1207_v48 = vadd.f32 %v2966_v45, %v1206_v43 }
 0x2da   :  { %v1507_v52 = vsel %vm1363_vm0, %v1212_v49, -1e+30 }
 0x2db   :  { %v1506_v51 = vsel %vm1362_vm15, %v1207_v48, -1e+30 }
 0x2dc   :  { %1586 = vxpose.xlu0.b32.cont [15/16] (narrow) %v1506_v51, 8 }
 0x2e0   :  { %1587 = vxpose.xlu0.b32.end [16/16] (narrow) %v1507_v52, 8 }
 0x2e4   :  { %v1556_v47 = vpop.trf.xlu1 }
 0x2e5   :  { %v1606_v53 = vcombine.low %v1524_v42, %v1556_v47  ;;  %v1612_v54 = vsel %vm1610_vm1, %v1556_v47, -inf }
 0x2e6   :  { %v1614_v59 = vmax.f32 %v1611_v56, %v1612_v54 }
 0x2e7   :  { %1608 = vst [vmem:[#allocation9] sm:$0xff] %v1606_v53 }
 0x309   :  { %2277 = vset.pattern.permute.xlu0 %v2603_v1 }
 0x324   :  { %v1588_v41 = vpop.trf.xlu0 }
 0x325   :  { %1609 = vst [vmem:[#allocation9 + $0x8] sm:$0xf] %v1588_v41  ;;  %v1613_v45 = vsel %vm1610_vm1, %v1588_v41, -inf }
 0x326   :  { %v1615_v62 = vmax.f32 %v1614_v59, %v1613_v45 }
 0x328   :  { %1616 = vmax.xlane.f32.xlu1 %v1615_v62 }
 0x3b5   :  { %v1617_v63 = vpop.xlane.xlu1 %1616 }
 0x3b6   :  { %v1619_v61 = vmax.f32 %v1618_v58, %v1617_v63 }
 0x3b8   :  { %v1620_v4 = vsub.f32 %v1618_v58, %v1619_v61  ;;  %1798 = vst.msk [vmem:[%s3195_s7] sm:$0xf] %vm70_vm3, %v1619_v61  ;;  %1625 = vperm.xlu1 %2276, %v1619_v61   ;;  %s2607_s7 = smov [#allocation9]  }
 0x3b9   :  { %s1809_s11 = sshll.u32 %s2607_s7, 4  ;;  %s1810_s11 = int_to_ptr.vmem [resolvable:$true] %s1809_s11 }
 0x3ba   :  { %v1621_v5 = vmul.f32 1.442695, %v1620_v4  ;;  %s2546_s12 = scalar_lea.vmem %s1810_s11, 192  ;;  %p2551_p3 = scmp.lt.s32.totalorder %s1810_s11, %s1810_s11 }
 0x3bb   :  { %p2547_p2 = scmp.ne.s32.totalorder %s1810_s11, %s2546_s12  ;;  %p2552_p4 = scmp.lt.s32.totalorder %s2546_s12, %s2546_s12 }
 0x3bc   :  { %2494 = vpow2.f32 %v1621_v5 }
 0x3bd   :  { %p2553_p5 = por %p2552_p4, %p2551_p3 }
 0x3bf   :  { %p2554_p6 = pnand %p2553_p5, %p2547_p2 }
 0x3c6   :  { %v2495_v9 = vpop.eup %2494 }
 0x3c7   :  { %1652 = vperm.xlu0 %2277, %v2495_v9  }
 0x437   :  { %v1626_v14 = vpop.permute.xlu1 %1625 }
 0x438   :  { %v1628_v15 = vsub.f32 %v1524_v42, %v1626_v14  ;;  %v1629_v8 = vsub.f32 %v1556_v47, %v1626_v14  ;;  %v1630_v20 = vsub.f32 %v1588_v41, %v1626_v14 }
 0x43a   :  { %v1631_v21 = vmul.f32 1.442695, %v1628_v15  ;;  %v1633_v23 = vmul.f32 1.442695, %v1629_v8  ;;  %v1635_v24 = vmul.f32 1.442695, %v1630_v20 }
 0x43c   :  { %2496 = vpow2.f32 %v1631_v21 }
 0x43d   :  { %2498 = vpow2.f32 %v1633_v23 }
 0x43e   :  { %2500 = vpow2.f32 %v1635_v24 }
 0x446   :  { %v2497_v25 = vpop.eup %2496 }
 0x447   :  { %v2499_v26 = vpop.eup %2498  ;;  %v1639_v31 = vsel %vm1610_vm1, %v2497_v25, 0.0 }
 0x448   :  { %v2501_v32 = vpop.eup %2500  ;;  %1720 = vmatprep.mubr.f32.mxu1 %v2499_v26  ;;  %v1640_v35 = vsel %vm1610_vm1, %v2499_v26, 0.0 }
 0x449   :  { %1721 = vmatmul.mubr.f32.vlgmr.msra.gmra.mrb[48].mxu1 %v2497_v25  ;;  %v1641_v36 = vadd.f32 %v1640_v35, %v1639_v31  ;;  %v1642_v37 = vsel %vm1610_vm1, %v2501_v32, 0.0 }
 0x44a   :  { %2243 = vmatpush3.bf16.msra.mxu1 %v2242_v6  ;;  %2174 = vmatprep.mubr.msk.f32.mxu1 %vm2606_vm2, %v2604_v46 }
 0x44b   :  { %2244 = vmatprep.subr.bf16.mxu1 %v2605_v10  ;;  %v1643_v30 = vadd.f32 %v1642_v37, %v1641_v36 }
 0x44d   :  { %1644 = vadd.xlane.f32.xlu1 %v1643_v30 }
 0x44e   :  { %2246 = vmatpush3.bf16.msra.mxu1 %v2245_v17 }
 0x44f   :  { %2247 = vmatprep.subr.bf16.mxu1 %v2605_v10 }
 0x452   :  { %2249 = vmatpush3.bf16.msra.mxu1 %v2248_v28 }
 0x453   :  { %2250 = vmatprep.subr.bf16.mxu1 %v2605_v10 }
 0x456   :  { %2252 = vmatpush3.bf16.msra.mxu1 %v2251_v39 }
 0x457   :  { %2253 = vmatprep.subr.bf16.mxu1 %v2605_v10 }
 0x45a   :  { %2255 = vmatpush3.bf16.msra.mxu1 %v2254_v50 }
 0x45b   :  { %2256 = vmatprep.subr.bf16.mxu1 %v2605_v10 }
 0x45e   :  { %2258 = vmatpush3.bf16.msra.mxu1 %v2257_v60 }
 0x45f   :  { %2259 = vmatprep.subr.bf16.mxu1 %v2605_v10 }
 0x462   :  { %2261 = vmatpush3.bf16.msra.mxu1 %v2260_v11 }
 0x463   :  { %2262 = vmatprep.subr.bf16.mxu1 %v2605_v10 }
 0x466   :  { %2264 = vmatpush3.bf16.msra.mxu1 %v2263_v34 }
 0x469   :  { %2175 = vmatmul.mubr.f32.vlgmr.msra.gmra.mrb[50].mxu1 %v2501_v32 }
 0x46a   :  { %2557 = shalt.err (!%p2554_p6)
}
 0x46b   :  { %s2558_s2 = scalar_lea.hbm %s3194_s6, 192 }
 0x46c   :  { %p2559_p7 = scmp.ne.s32.totalorder %s3194_s6, %s2558_s2  ;;  %p2562_p8 = scmp.lt.u32.totalorder %s2558_s2, %s3194_s6 }
 0x46e   :  { %p2564_p9 = pnand %p2562_p8, %p2559_p7 }
 0x470   :  { %2567 = shalt.err (!%p2564_p9)
}
 0x471   :  { %1812 = dma.vmem_to_hbm [thread:$0]  %s1810_s11, 192, %s3194_s6, [#allocation6]   ;;  %v1637_v0 = vld [vmem:[%s3196_s8] sm:$0xf]  ;;  %v1649_v18 = vld [vmem:[#allocation10] sm:$0xf]  ;;  %v1653_v28 = vpop.permute.xlu0 %1652 }
 0x472   :  { %v1638_v3 = vmul.f32 %v2495_v9, %v1637_v0  ;;  %s2608_s3 = smov [#allocation10]   ;;  %v1655_v29 = vmul.f32 %v1653_v28, %v1649_v18 }
 0x473   :  { %s1823_s6 = sshll.u32 %s2608_s3, 4  ;;  %s1824_s6 = int_to_ptr.vmem [resolvable:$true] %s1823_s6 }
 0x474   :  { %s2568_s22 = scalar_lea.vmem %s1824_s6, 64  ;;  %p2573_p11 = scmp.lt.s32.totalorder %s1824_s6, %s1824_s6 }
 0x475   :  { %p2569_p10 = scmp.ne.s32.totalorder %s1824_s6, %s2568_s22  ;;  %p2574_p12 = scmp.lt.s32.totalorder %s2568_s22, %s2568_s22 }
 0x477   :  { %p2575_p13 = por %p2574_p12, %p2573_p11 }
 0x479   :  { %p2576_p0 = pnand %p2575_p13, %p2569_p10 }
 0x4da   :  { %v1645_v6 = vpop.xlane.xlu1 %1644 }
 0x4db   :  { %v1646_v16 = vadd.f32 %v1645_v6, %v1638_v3 }
 0x4dd   :  { %1648 = vst.msk [vmem:[%s3196_s8] sm:$0xf] %vm70_vm3, %v1646_v16 }
 0x51c   :  { %v2018_v7 = vpop.f32.mrb[48].mxu1 }
 0x51d   :  { %v2019_v17 = vpop.f32.mrb[49].mxu1 }
 0x51e   :  { %v2020_v27 = vadd.f32 %v2019_v17, %v2018_v7 }
 0x53c   :  { %v1792_v38 = vpop.f32.mrb[50].mxu1 }
 0x53d   :  { %v1793_v39 = vadd.f32 %v2020_v27, %v1792_v38  ;;  %v2176_v55 = vpop.f32.mrb[51].mxu1 }
 0x53f   :  { %v1796_v40 = vadd.f32 %v1793_v39, %v1655_v29 }
 0x541   :  { %1797 = vst [vmem:[#allocation10] sm:$0xf] %v1796_v40 }
 0x542   :  { %2579 = shalt.err (!%p2576_p0)
}
 0x543   :  { %s2580_s24 = scalar_lea.hbm %s3197_s9, 64 }
 0x544   :  { %p2581_p1 = scmp.ne.s32.totalorder %s3197_s9, %s2580_s24  ;;  %p2584_p2 = scmp.lt.u32.totalorder %s2580_s24, %s3197_s9 }
 0x546   :  { %p2586_p3 = pnand %p2584_p2, %p2581_p1 }
 0x548   :  { %2589 = shalt.err (!%p2586_p3)
}
 0x549   :  { %1826 = dma.vmem_to_hbm [thread:$0]  %s1824_s6, 64, %s3197_s9, [#allocation11]  }
 0x54a   :  { %2594 = dma.done.wait [#allocation6], 192  }
 0x54b   :  { %2595 = vsyncadd [#allocation6], 4294967104 }
 0x54c   :  { %2596 = dma.done.wait [#allocation11], 64  }
 0x54d   :  { %2597 = vsyncadd [#allocation11], 4294967232 }
 0x54e   :  { %1837 = vsyncpa [#allocation5], 1 }
 0x54f   :  { %1838 = vsyncpa [#allocation8], 1 }
 0x550   :  { %1839 = vsyncpa [#allocation6], 1 }
 0x551   :  { %1840 = vsyncpa [#allocation11], 1 }

</bundles_post_ra>
